<compile_context>
chip_gen: v7x
topology: tpu7x:2x2x1
jax: 0.10.0
libtpu: 0.0.40
codegen_flags: <defaults>
</compile_context>

<pallas_src>
import functools

import jax
import jax.numpy as jnp
from jax import lax
from jax.experimental import pallas as pl
from jax.experimental.pallas import tpu as pltpu


def _round_up(n, m):
    return ((n + m - 1) // m) * m


def _tile_bytes(shape, dtype):
    """Bytes of a VMEM-resident block, rounded up to (8, 128) tiles."""
    shape = list(shape)
    shape[-1] = _round_up(shape[-1], 128)
    if len(shape) >= 2:
        shape[-2] = _round_up(shape[-2], 8)
    n = 1
    for d in shape:
        n *= d
    return n * jnp.dtype(dtype).itemsize


def _vmem_capacity_bytes():
    """Physical VMEM per TensorCore; conservative fallback if query fails."""
    try:
        return int(pltpu.get_tpu_info().vmem_capacity_bytes)
    except Exception:
        return 64 << 20  # v7x per-TC VMEM (smallest of the supported gens)


def _rnn_block_kernel(x_ref, wih_ref, bias_ref, whh_ref, wout_ref, bout_ref,
                      out_ref, h_ref, xp_ref,
                      *, t_blk, ns, nsteps, needs_mask, mm_dtype, unroll):
    """One grid step = one (batch-tile, time-block) pair.

    grid = (n_batch_tiles, n_time_blocks); time is innermost / sequential.

    x_ref    : (t_blk*ns, insize)  flattened time-block of one batch tile
    wih_ref  : (insize, H)         W_ih^T   (zero-padded, resident)
    bias_ref : (1, H)              b_ih + b_hh
    whh_ref  : (H, H)              W_hh^T
    wout_ref : (H, O)              W_out^T
    bout_ref : (1, O)              b_out
    out_ref  : (ns, O)             output for this batch tile (last block)
    h_ref    : (ns, H)  f32 VMEM   hidden state carried across time blocks
    xp_ref   : (t_blk*ns, H)       per-block input-projection scratch
    """
    tb = pl.program_id(1)
    n_tb = pl.num_programs(1)

    @pl.when(tb == 0)
    def _init():
        h_ref[...] = jnp.zeros_like(h_ref)

    # ---- batched input projection for the whole block (off the serial
    # ---- per-step chain): (t_blk*ns, I) x (I, H) + folded bias -> scratch.
    xp_ref[...] = (
        jnp.dot(x_ref[...], wih_ref[...], preferred_element_type=jnp.float32)
        + bias_ref[...]).astype(xp_ref.dtype)

    whh = whh_ref[...]
    t0 = tb * t_blk

    def recur(masked):
        def body(i, h):
            row = pl.multiple_of(i * ns, 8)
            pre = xp_ref[pl.ds(row, ns), :] + jnp.dot(
                h.astype(mm_dtype), whh, preferred_element_type=jnp.float32)
            h_new = jnp.maximum(pre, 0.0)  # relu
            if masked:
                # steps beyond the true sequence length leave h unchanged
                h_new = jnp.where(t0 + i < nsteps, h_new, h)
            return h_new
        return lax.fori_loop(0, t_blk, body, h_ref[...], unroll=unroll)

    if not needs_mask:
        h_ref[...] = recur(False)
    else:
        is_last = tb == n_tb - 1

        @pl.when(jnp.logical_not(is_last))
        def _unmasked():
            h_ref[...] = recur(False)

        @pl.when(is_last)
        def _masked():
            h_ref[...] = recur(True)

    # ---- output head on the final hidden state (last time block only).
    @pl.when(tb == n_tb - 1)
    def _final():
        y = (jnp.dot(h_ref[...].astype(mm_dtype), wout_ref[...],
                     preferred_element_type=jnp.float32) + bout_ref[...])
        out_ref[...] = y.astype(out_ref.dtype)


def pytorch_rnn_forward(x, params, *, t_block=32, use_bf16_matmul=False):
    """Pallas forward pass of PytorchRNN.

    x: (nsteps, nsamples, insize) or (nsamples, insize)
    returns: (nsamples, outsize)
    """
    if x.ndim == 2:
        x = x[None]
    nsteps, nsamples, insize = x.shape
    assert nsteps >= 1, "empty sequence not supported"

    w_ih, w_hh = params["w_ih"], params["w_hh"]
    b_ih, b_hh = params["b_ih"], params["b_hh"]
    w_out, b_out = params["w_out"], params["b_out"]
    hidden = w_ih.shape[0]
    outsize = w_out.shape[0]

    f32 = jnp.float32
    mm_dtype = jnp.bfloat16 if use_bf16_matmul else f32
    x_dtype = mm_dtype        # x is streamed: bf16 halves DMA bytes when enabled
    xp_dtype = mm_dtype       # projection scratch in matmul dtype
    out_dtype = x.dtype

    # ---- TPU-friendly padded shapes & batch tiling -----------------------
    ns_p = _round_up(max(nsamples, 1), 8)        # sublane dim (matmul M)
    if ns_p > 256:
        ns_tile = 256
        ns_p = _round_up(ns_p, ns_tile)
    else:
        ns_tile = ns_p
    n_bt = ns_p // ns_tile                        # batch tiles ("parallel")

    h_p = _round_up(hidden, 128)                  # lane dim
    o_p = _round_up(outsize, 128)                 # lane-dense output
    t_blk = max(1, min(nsteps, int(t_block)))
    n_blk = pl.cdiv(nsteps, t_blk)
    t_p = n_blk * t_blk
    needs_mask = (t_p != nsteps)
    unroll = max(1, min(t_blk, 8))

    # ---- padded operands (all zero padding -> math is unchanged) ---------
    x_p = jnp.pad(x.astype(x_dtype),
                  ((0, t_p - nsteps), (0, ns_p - nsamples), (0, 0)))
    # (t, n_bt, ns_tile, I) -> (n_bt, t, ns_tile, I) -> (n_bt, t*ns_tile, I)
    x_p = x_p.reshape(t_p, n_bt, ns_tile, insize).transpose(1, 0, 2, 3)
    x_blk = x_p.reshape(n_bt, t_p * ns_tile, insize)

    wih_t = jnp.pad(w_ih.astype(f32).T,
                    ((0, 0), (0, h_p - hidden))).astype(mm_dtype)
    whh_t = jnp.pad(w_hh.astype(f32).T,
                    ((0, h_p - hidden), (0, h_p - hidden))).astype(mm_dtype)
    wout_t = jnp.pad(w_out.astype(f32).T,
                     ((0, h_p - hidden), (0, o_p - outsize))).astype(mm_dtype)
    bias = jnp.pad((b_ih + b_hh).astype(f32)[None, :],
                   ((0, 0), (0, h_p - hidden)))        # folded RNN biases
    bout = jnp.pad(b_out.astype(f32)[None, :], ((0, 0), (0, o_p - outsize)))

    kernel = functools.partial(
        _rnn_block_kernel, t_blk=t_blk, ns=ns_tile, nsteps=nsteps,
        needs_mask=needs_mask, mm_dtype=mm_dtype, unroll=unroll)

    vmem_cap = int(0.85 * _vmem_capacity_bytes())

    def _build(single_buffer_weights):
        wkw = ({"pipeline_mode": pl.Buffered(1)}
               if single_buffer_weights else {})
        w_buf = 1 if single_buffer_weights else 2
        resident = (
            2 * _tile_bytes((t_blk * ns_tile, insize), x_dtype)   # x stream
            + w_buf * (_tile_bytes((insize, h_p), mm_dtype)
                       + _tile_bytes((1, h_p), f32)
                       + _tile_bytes((h_p, h_p), mm_dtype)
                       + _tile_bytes((h_p, o_p), mm_dtype)
                       + _tile_bytes((1, o_p), f32))
            + 2 * _tile_bytes((ns_tile, o_p), out_dtype)          # out block
            + _tile_bytes((ns_tile, h_p), f32)                    # h scratch
            + _tile_bytes((t_blk * ns_tile, h_p), xp_dtype))      # xp scratch
        vmem_limit = min(max(resident + (4 << 20), 16 << 20), vmem_cap)

        return pl.pallas_call(
            kernel,
            out_shape=jax.ShapeDtypeStruct((ns_p, o_p), out_dtype),
            grid_spec=pltpu.PrefetchScalarGridSpec(
                num_scalar_prefetch=0,
                grid=(n_bt, n_blk),          # (batch tiles, time blocks)
                in_specs=[
                    # streamed: one time-block of one batch tile per step
                    pl.BlockSpec((None, t_blk * ns_tile, insize),
                                 lambda bt, tb: (bt, tb, 0)),
                    # resident weights / biases (single-buffered when allowed)
                    pl.BlockSpec((insize, h_p), lambda bt, tb: (0, 0), **wkw),
                    pl.BlockSpec((1, h_p), lambda bt, tb: (0, 0), **wkw),
                    pl.BlockSpec((h_p, h_p), lambda bt, tb: (0, 0), **wkw),
                    pl.BlockSpec((h_p, o_p), lambda bt, tb: (0, 0), **wkw),
                    pl.BlockSpec((1, o_p), lambda bt, tb: (0, 0), **wkw),
                ],
                out_specs=pl.BlockSpec((ns_tile, o_p), lambda bt, tb: (bt, 0)),
                scratch_shapes=[
                    pltpu.VMEM((ns_tile, h_p), jnp.float32),        # hidden h
                    pltpu.VMEM((t_blk * ns_tile, h_p), xp_dtype),   # xproj
                ],
            ),
            compiler_params=pltpu.CompilerParams(
                dimension_semantics=("parallel", "arbitrary"),
                vmem_limit_bytes=int(vmem_limit)),
        )

    try:
        out_p = _build(True)(x_blk, wih_t, bias, whh_t, wout_t, bout)
    except Exception:
        # Fallback: default double-buffered weights if Buffered(1) is rejected.
        out_p = _build(False)(x_blk, wih_t, bias, whh_t, wout_t, bout)

    return out_p[:nsamples, :outsize]


def init_params(key, insize, hidden, outsize, dtype=jnp.float32):
    """PyTorch-style U(-1/sqrt(H), 1/sqrt(H)) init."""
    ks = jax.random.split(key, 6)
    k = 1.0 / jnp.sqrt(hidden)
    return {
        "w_ih": jax.random.uniform(ks[0], (hidden, insize), dtype, -k, k),
        "w_hh": jax.random.uniform(ks[1], (hidden, hidden), dtype, -k, k),
        "b_ih": jax.random.uniform(ks[2], (hidden,), dtype, -k, k),
        "b_hh": jax.random.uniform(ks[3], (hidden,), dtype, -k, k),
        "w_out": jax.random.uniform(ks[4], (outsize, hidden), dtype, -k, k),
        "b_out": jax.random.uniform(ks[5], (outsize,), dtype, -k, k),
    }


def _reference_forward(x, params):
    """Pure-JAX reference of the same forward pass."""
    if x.ndim == 2:
        x = x[None]
    h = jnp.zeros((x.shape[1], params["w_ih"].shape[0]), jnp.float32)
    for t in range(x.shape[0]):
        h = jax.nn.relu(x[t] @ params["w_ih"].T + params["b_ih"]
                        + h @ params["w_hh"].T + params["b_hh"])
    return h @ params["w_out"].T + params["b_out"]


if __name__ == "__main__":
    key = jax.random.PRNGKey(0)
    k_x, k_p, k_x2 = jax.random.split(key, 3)

    # --- test 1: small shapes; whole sequence fits in one time block ------
    nsteps, nsamples, insize = 8, 4, 16
    hidden, outsize = 32, 4
    params = init_params(k_p, insize, hidden, outsize)
    x = jax.random.normal(k_x, (nsteps, nsamples, insize), jnp.float32)

    out = jax.block_until_ready(pytorch_rnn_forward(x, params))
    ref = _reference_forward(x, params)
    assert out.shape == (nsamples, outsize)
    assert jnp.allclose(out, ref, atol=1e-4, rtol=1e-4)

    # --- test 2: ragged nsteps/nsamples exercising multi-block + tail mask
    x2 = jax.random.normal(k_x2, (19, 5, insize), jnp.float32)
    out2 = jax.block_until_ready(pytorch_rnn_forward(x2, params, t_block=8))
    ref2 = _reference_forward(x2, params)
    assert out2.shape == (5, outsize)
    assert jnp.allclose(out2, ref2, atol=1e-4, rtol=1e-4)

    # --- test 3: bf16 matmul path (f32 accumulate), looser tolerance ------
    out3 = jax.block_until_ready(
        pytorch_rnn_forward(x, params, use_bf16_matmul=True))
    assert out3.shape == (nsamples, outsize)
    assert jnp.allclose(out3, ref, atol=5e-2, rtol=5e-2)

    print("KERNEL_OK")
</pallas_src>

<mosaic_0001>
module attributes {stable_mosaic.version = 11 : i64} {
  func.func @_rnn_block_kernel(%arg0: i32, %arg1: i32, %arg2: memref<1x64x16xf32, #tpu.memory_space<vmem>>, %arg3: memref<16x128xf32, #tpu.memory_space<vmem>>, %arg4: memref<1x128xf32, #tpu.memory_space<vmem>>, %arg5: memref<128x128xf32, #tpu.memory_space<vmem>>, %arg6: memref<128x128xf32, #tpu.memory_space<vmem>>, %arg7: memref<1x128xf32, #tpu.memory_space<vmem>>, %arg8: memref<8x128xf32, #tpu.memory_space<vmem>>, %arg9: memref<8x128xf32, #tpu.memory_space<vmem>>, %arg10: memref<64x128xf32, #tpu.memory_space<vmem>>) attributes {dimension_semantics = [#tpu.dimension_semantics<parallel>, #tpu.dimension_semantics<arbitrary>], iteration_bounds = array<i64: 1, 1>, scalar_prefetch = 0 : i64, scratch_operands = 2 : i64, tpu.core_type = #tpu.core_type<tc>, window_params = [{transform_indices = @transform_0, window_bounds = array<i64: 1, 64, 16>}, {pipeline_mode = #tpu.pipeline_mode<synchronous>, transform_indices = @transform_1, window_bounds = array<i64: 16, 128>}, {pipeline_mode = #tpu.pipeline_mode<synchronous>, transform_indices = @transform_2, window_bounds = array<i64: 1, 128>}, {pipeline_mode = #tpu.pipeline_mode<synchronous>, transform_indices = @transform_3, window_bounds = array<i64: 128, 128>}, {pipeline_mode = #tpu.pipeline_mode<synchronous>, transform_indices = @transform_4, window_bounds = array<i64: 128, 128>}, {pipeline_mode = #tpu.pipeline_mode<synchronous>, transform_indices = @transform_5, window_bounds = array<i64: 1, 128>}, {transform_indices = @transform_6, window_bounds = array<i64: 8, 128>}]} {
    %c0_i32 = arith.constant 0 : i32
    %0 = arith.cmpi eq, %arg1, %c0_i32 : i32
    %1 = arith.extui %0 : i1 to i32
    %c0_i32_0 = arith.constant 0 : i32
    %2 = arith.cmpi ne, %1, %c0_i32_0 : i32
    scf.if %2 {
      %cst_50 = arith.constant 0.000000e+00 : f32
      %81 = vector.broadcast %cst_50 : f32 to vector<8x128xf32>
      %c0_51 = arith.constant 0 : index
      %c0_52 = arith.constant 0 : index
      %82 = vector.load %arg9[%c0_51, %c0_52] : memref<8x128xf32, #tpu.memory_space<vmem>>, vector<8x128xf32>
      tpu.vector_store %arg9[%c0_51, %c0_52], %81 {strides = array<i32>} : memref<8x128xf32, #tpu.memory_space<vmem>>, vector<8x128xf32>,
    } else {
    }
    %c0 = arith.constant 0 : index
    %c0_1 = arith.constant 0 : index
    %c0_2 = arith.constant 0 : index
    %3 = vector.load %arg2[%c0, %c0_1, %c0_2] : memref<1x64x16xf32, #tpu.memory_space<vmem>>, vector<1x64x16xf32>
    %4 = vector.shape_cast %3 : vector<1x64x16xf32> to vector<64x16xf32>
    %c0_3 = arith.constant 0 : index
    %c0_4 = arith.constant 0 : index
    %5 = vector.load %arg3[%c0_3, %c0_4] : memref<16x128xf32, #tpu.memory_space<vmem>>, vector<16x128xf32>
    %cst = arith.constant dense<0.000000e+00> : vector<64x128xf32>
    %6 = tpu.matmul %4, %5, %cst {dimension_numbers = #tpu.dot_dimension_numbers<[1], [0], [0], [1], [0, 0, 1, 1], [], []>} : vector<64x16xf32>, vector<16x128xf32>, vector<64x128xf32> -> vector<64x128xf32>
    %c0_5 = arith.constant 0 : index
    %c0_6 = arith.constant 0 : index
    %7 = vector.load %arg4[%c0_5, %c0_6] : memref<1x128xf32, #tpu.memory_space<vmem>>, vector<1x128xf32>
    %8 = vector.broadcast %7 : vector<1x128xf32> to vector<64x128xf32>
    %9 = arith.addf %6, %8 : vector<64x128xf32>
    %c0_7 = arith.constant 0 : index
    %c0_8 = arith.constant 0 : index
    %10 = vector.load %arg10[%c0_7, %c0_8] : memref<64x128xf32, #tpu.memory_space<vmem>>, vector<64x128xf32>
    tpu.vector_store %arg10[%c0_7, %c0_8], %9 {strides = array<i32>} : memref<64x128xf32, #tpu.memory_space<vmem>>, vector<64x128xf32>,
    %c0_9 = arith.constant 0 : index
    %c0_10 = arith.constant 0 : index
    %11 = vector.load %arg5[%c0_9, %c0_10] : memref<128x128xf32, #tpu.memory_space<vmem>>, vector<128x128xf32>
    %c0_11 = arith.constant 0 : index
    %c0_12 = arith.constant 0 : index
    %12 = vector.load %arg9[%c0_11, %c0_12] : memref<8x128xf32, #tpu.memory_space<vmem>>, vector<8x128xf32>
    %c0_i32_13 = arith.constant 0 : i32
    %c8_i32 = arith.constant 8 : i32
    %13 = arith.muli %c0_i32_13, %c8_i32 : i32
    %14 = tpu.assume_multiple %13, 8 : i32
    %15 = arith.index_cast %14 : i32 to index
    %c0_14 = arith.constant 0 : index
    %16 = vector.load %arg10[%15, %c0_14] : memref<64x128xf32, #tpu.memory_space<vmem>>, vector<8x128xf32>
    %cst_15 = arith.constant dense<0.000000e+00> : vector<8x128xf32>
    %17 = tpu.matmul %12, %11, %cst_15 {dimension_numbers = #tpu.dot_dimension_numbers<[1], [0], [0], [1], [0, 0, 1, 1], [], []>} : vector<8x128xf32>, vector<128x128xf32>, vector<8x128xf32> -> vector<8x128xf32>
    %18 = arith.addf %16, %17 : vector<8x128xf32>
    %cst_16 = arith.constant 0.000000e+00 : f32
    %19 = vector.broadcast %cst_16 : f32 to vector<8x128xf32>
    %20 = arith.maximumf %18, %19 : vector<8x128xf32>
    %c1_i32 = arith.constant 1 : i32
    %c8_i32_17 = arith.constant 8 : i32
    %21 = arith.muli %c1_i32, %c8_i32_17 : i32
    %22 = tpu.assume_multiple %21, 8 : i32
    %23 = arith.index_cast %22 : i32 to index
    %c0_18 = arith.constant 0 : index
    %24 = vector.load %arg10[%23, %c0_18] : memref<64x128xf32, #tpu.memory_space<vmem>>, vector<8x128xf32>
    %cst_19 = arith.constant dense<0.000000e+00> : vector<8x128xf32>
    %25 = tpu.matmul %20, %11, %cst_19 {dimension_numbers = #tpu.dot_dimension_numbers<[1], [0], [0], [1], [0, 0, 1, 1], [], []>} : vector<8x128xf32>, vector<128x128xf32>, vector<8x128xf32> -> vector<8x128xf32>
    %26 = arith.addf %24, %25 : vector<8x128xf32>
    %cst_20 = arith.constant 0.000000e+00 : f32
    %27 = vector.broadcast %cst_20 : f32 to vector<8x128xf32>
    %28 = arith.maximumf %26, %27 : vector<8x128xf32>
    %c2_i32 = arith.constant 2 : i32
    %c8_i32_21 = arith.constant 8 : i32
    %29 = arith.muli %c2_i32, %c8_i32_21 : i32
    %30 = tpu.assume_multiple %29, 8 : i32
    %31 = arith.index_cast %30 : i32 to index
    %c0_22 = arith.constant 0 : index
    %32 = vector.load %arg10[%31, %c0_22] : memref<64x128xf32, #tpu.memory_space<vmem>>, vector<8x128xf32>
    %cst_23 = arith.constant dense<0.000000e+00> : vector<8x128xf32>
    %33 = tpu.matmul %28, %11, %cst_23 {dimension_numbers = #tpu.dot_dimension_numbers<[1], [0], [0], [1], [0, 0, 1, 1], [], []>} : vector<8x128xf32>, vector<128x128xf32>, vector<8x128xf32> -> vector<8x128xf32>
    %34 = arith.addf %32, %33 : vector<8x128xf32>
    %cst_24 = arith.constant 0.000000e+00 : f32
    %35 = vector.broadcast %cst_24 : f32 to vector<8x128xf32>
    %36 = arith.maximumf %34, %35 : vector<8x128xf32>
    %c3_i32 = arith.constant 3 : i32
    %c8_i32_25 = arith.constant 8 : i32
    %37 = arith.muli %c3_i32, %c8_i32_25 : i32
    %38 = tpu.assume_multiple %37, 8 : i32
    %39 = arith.index_cast %38 : i32 to index
    %c0_26 = arith.constant 0 : index
    %40 = vector.load %arg10[%39, %c0_26] : memref<64x128xf32, #tpu.memory_space<vmem>>, vector<8x128xf32>
    %cst_27 = arith.constant dense<0.000000e+00> : vector<8x128xf32>
    %41 = tpu.matmul %36, %11, %cst_27 {dimension_numbers = #tpu.dot_dimension_numbers<[1], [0], [0], [1], [0, 0, 1, 1], [], []>} : vector<8x128xf32>, vector<128x128xf32>, vector<8x128xf32> -> vector<8x128xf32>
    %42 = arith.addf %40, %41 : vector<8x128xf32>
    %cst_28 = arith.constant 0.000000e+00 : f32
    %43 = vector.broadcast %cst_28 : f32 to vector<8x128xf32>
    %44 = arith.maximumf %42, %43 : vector<8x128xf32>
    %c4_i32 = arith.constant 4 : i32
    %c8_i32_29 = arith.constant 8 : i32
    %45 = arith.muli %c4_i32, %c8_i32_29 : i32
    %46 = tpu.assume_multiple %45, 8 : i32
    %47 = arith.index_cast %46 : i32 to index
    %c0_30 = arith.constant 0 : index
    %48 = vector.load %arg10[%47, %c0_30] : memref<64x128xf32, #tpu.memory_space<vmem>>, vector<8x128xf32>
    %cst_31 = arith.constant dense<0.000000e+00> : vector<8x128xf32>
    %49 = tpu.matmul %44, %11, %cst_31 {dimension_numbers = #tpu.dot_dimension_numbers<[1], [0], [0], [1], [0, 0, 1, 1], [], []>} : vector<8x128xf32>, vector<128x128xf32>, vector<8x128xf32> -> vector<8x128xf32>
    %50 = arith.addf %48, %49 : vector<8x128xf32>
    %cst_32 = arith.constant 0.000000e+00 : f32
    %51 = vector.broadcast %cst_32 : f32 to vector<8x128xf32>
    %52 = arith.maximumf %50, %51 : vector<8x128xf32>
    %c5_i32 = arith.constant 5 : i32
    %c8_i32_33 = arith.constant 8 : i32
    %53 = arith.muli %c5_i32, %c8_i32_33 : i32
    %54 = tpu.assume_multiple %53, 8 : i32
    %55 = arith.index_cast %54 : i32 to index
    %c0_34 = arith.constant 0 : index
    %56 = vector.load %arg10[%55, %c0_34] : memref<64x128xf32, #tpu.memory_space<vmem>>, vector<8x128xf32>
    %cst_35 = arith.constant dense<0.000000e+00> : vector<8x128xf32>
    %57 = tpu.matmul %52, %11, %cst_35 {dimension_numbers = #tpu.dot_dimension_numbers<[1], [0], [0], [1], [0, 0, 1, 1], [], []>} : vector<8x128xf32>, vector<128x128xf32>, vector<8x128xf32> -> vector<8x128xf32>
    %58 = arith.addf %56, %57 : vector<8x128xf32>
    %cst_36 = arith.constant 0.000000e+00 : f32
    %59 = vector.broadcast %cst_36 : f32 to vector<8x128xf32>
    %60 = arith.maximumf %58, %59 : vector<8x128xf32>
    %c6_i32 = arith.constant 6 : i32
    %c8_i32_37 = arith.constant 8 : i32
    %61 = arith.muli %c6_i32, %c8_i32_37 : i32
    %62 = tpu.assume_multiple %61, 8 : i32
    %63 = arith.index_cast %62 : i32 to index
    %c0_38 = arith.constant 0 : index
    %64 = vector.load %arg10[%63, %c0_38] : memref<64x128xf32, #tpu.memory_space<vmem>>, vector<8x128xf32>
    %cst_39 = arith.constant dense<0.000000e+00> : vector<8x128xf32>
    %65 = tpu.matmul %60, %11, %cst_39 {dimension_numbers = #tpu.dot_dimension_numbers<[1], [0], [0], [1], [0, 0, 1, 1], [], []>} : vector<8x128xf32>, vector<128x128xf32>, vector<8x128xf32> -> vector<8x128xf32>
    %66 = arith.addf %64, %65 : vector<8x128xf32>
    %cst_40 = arith.constant 0.000000e+00 : f32
    %67 = vector.broadcast %cst_40 : f32 to vector<8x128xf32>
    %68 = arith.maximumf %66, %67 : vector<8x128xf32>
    %c7_i32 = arith.constant 7 : i32
    %c8_i32_41 = arith.constant 8 : i32
    %69 = arith.muli %c7_i32, %c8_i32_41 : i32
    %70 = tpu.assume_multiple %69, 8 : i32
    %71 = arith.index_cast %70 : i32 to index
    %c0_42 = arith.constant 0 : index
    %72 = vector.load %arg10[%71, %c0_42] : memref<64x128xf32, #tpu.memory_space<vmem>>, vector<8x128xf32>
    %cst_43 = arith.constant dense<0.000000e+00> : vector<8x128xf32>
    %73 = tpu.matmul %68, %11, %cst_43 {dimension_numbers = #tpu.dot_dimension_numbers<[1], [0], [0], [1], [0, 0, 1, 1], [], []>} : vector<8x128xf32>, vector<128x128xf32>, vector<8x128xf32> -> vector<8x128xf32>
    %74 = arith.addf %72, %73 : vector<8x128xf32>
    %cst_44 = arith.constant 0.000000e+00 : f32
    %75 = vector.broadcast %cst_44 : f32 to vector<8x128xf32>
    %76 = arith.maximumf %74, %75 : vector<8x128xf32>
    %c8_i32_45 = arith.constant 8 : i32
    %c0_46 = arith.constant 0 : index
    %c0_47 = arith.constant 0 : index
    %77 = vector.load %arg9[%c0_46, %c0_47] : memref<8x128xf32, #tpu.memory_space<vmem>>, vector<8x128xf32>
    tpu.vector_store %arg9[%c0_46, %c0_47], %76 {strides = array<i32>} : memref<8x128xf32, #tpu.memory_space<vmem>>, vector<8x128xf32>,
    %c0_i32_48 = arith.constant 0 : i32
    %78 = arith.cmpi eq, %arg1, %c0_i32_48 : i32
    %79 = arith.extui %78 : i1 to i32
    %c0_i32_49 = arith.constant 0 : i32
    %80 = arith.cmpi ne, %79, %c0_i32_49 : i32
    scf.if %80 {
      %c0_50 = arith.constant 0 : index
      %c0_51 = arith.constant 0 : index
      %81 = vector.load %arg9[%c0_50, %c0_51] : memref<8x128xf32, #tpu.memory_space<vmem>>, vector<8x128xf32>
      %c0_52 = arith.constant 0 : index
      %c0_53 = arith.constant 0 : index
      %82 = vector.load %arg6[%c0_52, %c0_53] : memref<128x128xf32, #tpu.memory_space<vmem>>, vector<128x128xf32>
      %cst_54 = arith.constant dense<0.000000e+00> : vector<8x128xf32>
      %83 = tpu.matmul %81, %82, %cst_54 {dimension_numbers = #tpu.dot_dimension_numbers<[1], [0], [0], [1], [0, 0, 1, 1], [], []>} : vector<8x128xf32>, vector<128x128xf32>, vector<8x128xf32> -> vector<8x128xf32>
      %c0_55 = arith.constant 0 : index
      %c0_56 = arith.constant 0 : index
      %84 = vector.load %arg7[%c0_55, %c0_56] : memref<1x128xf32, #tpu.memory_space<vmem>>, vector<1x128xf32>
      %85 = vector.broadcast %84 : vector<1x128xf32> to vector<8x128xf32>
      %86 = arith.addf %83, %85 : vector<8x128xf32>
      %c0_57 = arith.constant 0 : index
      %c0_58 = arith.constant 0 : index
      %87 = vector.load %arg8[%c0_57, %c0_58] : memref<8x128xf32, #tpu.memory_space<vmem>>, vector<8x128xf32>
      tpu.vector_store %arg8[%c0_57, %c0_58], %86 {strides = array<i32>} : memref<8x128xf32, #tpu.memory_space<vmem>>, vector<8x128xf32>,
    } else {
    }
    return
  }
  func.func @transform_0(%arg0: i32, %arg1: i32) -> (i32, i32, i32) {
    %c0_i32 = arith.constant 0 : i32
    %c0_i32_0 = arith.constant 0 : i32
    return %arg0, %arg1, %c0_i32 : i32, i32, i32
  }
  func.func @transform_1(%arg0: i32, %arg1: i32) -> (i32, i32) {
    %c0_i32 = arith.constant 0 : i32
    %c0_i32_0 = arith.constant 0 : i32
    %c0_i32_1 = arith.constant 0 : i32
    return %c0_i32, %c0_i32_0 : i32, i32
  }
  func.func @transform_2(%arg0: i32, %arg1: i32) -> (i32, i32) {
    %c0_i32 = arith.constant 0 : i32
    %c0_i32_0 = arith.constant 0 : i32
    %c0_i32_1 = arith.constant 0 : i32
    return %c0_i32, %c0_i32_0 : i32, i32
  }
  func.func @transform_3(%arg0: i32, %arg1: i32) -> (i32, i32) {
    %c0_i32 = arith.constant 0 : i32
    %c0_i32_0 = arith.constant 0 : i32
    %c0_i32_1 = arith.constant 0 : i32
    return %c0_i32, %c0_i32_0 : i32, i32
  }
  func.func @transform_4(%arg0: i32, %arg1: i32) -> (i32, i32) {
    %c0_i32 = arith.constant 0 : i32
    %c0_i32_0 = arith.constant 0 : i32
    %c0_i32_1 = arith.constant 0 : i32
    return %c0_i32, %c0_i32_0 : i32, i32
  }
  func.func @transform_5(%arg0: i32, %arg1: i32) -> (i32, i32) {
    %c0_i32 = arith.constant 0 : i32
    %c0_i32_0 = arith.constant 0 : i32
    %c0_i32_1 = arith.constant 0 : i32
    return %c0_i32, %c0_i32_0 : i32, i32
  }
  func.func @transform_6(%arg0: i32, %arg1: i32) -> (i32, i32) {
    %c0_i32 = arith.constant 0 : i32
    %c0_i32_0 = arith.constant 0 : i32
    return %arg0, %c0_i32 : i32, i32
  }
}

module attributes {stable_mosaic.version = 11 : i64} {
  func.func @_rnn_block_kernel(%arg0: i32, %arg1: i32, %arg2: memref<1x64x16xf32, #tpu.memory_space<vmem>>, %arg3: memref<16x128xf32, #tpu.memory_space<vmem>>, %arg4: memref<1x128xf32, #tpu.memory_space<vmem>>, %arg5: memref<128x128xf32, #tpu.memory_space<vmem>>, %arg6: memref<128x128xf32, #tpu.memory_space<vmem>>, %arg7: memref<1x128xf32, #tpu.memory_space<vmem>>, %arg8: memref<8x128xf32, #tpu.memory_space<vmem>>, %arg9: memref<8x128xf32, #tpu.memory_space<vmem>>, %arg10: memref<64x128xf32, #tpu.memory_space<vmem>>) attributes {dimension_semantics = [#tpu.dimension_semantics<parallel>, #tpu.dimension_semantics<arbitrary>], iteration_bounds = array<i64: 1, 1>, scalar_prefetch = 0 : i64, scratch_operands = 2 : i64, tpu.core_type = #tpu.core_type<tc>, window_params = [{transform_indices = @transform_0, window_bounds = array<i64: 1, 64, 16>}, {pipeline_mode = #tpu.pipeline_mode<synchronous>, transform_indices = @transform_1, window_bounds = array<i64: 16, 128>}, {pipeline_mode = #tpu.pipeline_mode<synchronous>, transform_indices = @transform_2, window_bounds = array<i64: 1, 128>}, {pipeline_mode = #tpu.pipeline_mode<synchronous>, transform_indices = @transform_3, window_bounds = array<i64: 128, 128>}, {pipeline_mode = #tpu.pipeline_mode<synchronous>, transform_indices = @transform_4, window_bounds = array<i64: 128, 128>}, {pipeline_mode = #tpu.pipeline_mode<synchronous>, transform_indices = @transform_5, window_bounds = array<i64: 1, 128>}, {transform_indices = @transform_6, window_bounds = array<i64: 8, 128>}]} {
    %c0_i32 = arith.constant 0 : i32
    %0 = arith.cmpi eq, %arg1, %c0_i32 : i32
    %1 = arith.extui %0 : i1 to i32
    %c0_i32_0 = arith.constant 0 : i32
    %2 = arith.cmpi ne, %1, %c0_i32_0 : i32
    scf.if %2 {
      %cst_50 = arith.constant 0.000000e+00 : f32
      %81 = vector.broadcast %cst_50 : f32 to vector<8x128xf32>
      %c0_51 = arith.constant 0 : index
      %c0_52 = arith.constant 0 : index
      %82 = vector.load %arg9[%c0_51, %c0_52] : memref<8x128xf32, #tpu.memory_space<vmem>>, vector<8x128xf32>
      tpu.vector_store %arg9[%c0_51, %c0_52], %81 {strides = array<i32>} : memref<8x128xf32, #tpu.memory_space<vmem>>, vector<8x128xf32>,
    } else {
    }
    %c0 = arith.constant 0 : index
    %c0_1 = arith.constant 0 : index
    %c0_2 = arith.constant 0 : index
    %3 = vector.load %arg2[%c0, %c0_1, %c0_2] : memref<1x64x16xf32, #tpu.memory_space<vmem>>, vector<1x64x16xf32>
    %4 = vector.shape_cast %3 : vector<1x64x16xf32> to vector<64x16xf32>
    %c0_3 = arith.constant 0 : index
    %c0_4 = arith.constant 0 : index
    %5 = vector.load %arg3[%c0_3, %c0_4] : memref<16x128xf32, #tpu.memory_space<vmem>>, vector<16x128xf32>
    %cst = arith.constant dense<0.000000e+00> : vector<64x128xf32>
    %6 = tpu.matmul %4, %5, %cst {dimension_numbers = #tpu.dot_dimension_numbers<[1], [0], [0], [1], [0, 0, 1, 1], [], []>} : vector<64x16xf32>, vector<16x128xf32>, vector<64x128xf32> -> vector<64x128xf32>
    %c0_5 = arith.constant 0 : index
    %c0_6 = arith.constant 0 : index
    %7 = vector.load %arg4[%c0_5, %c0_6] : memref<1x128xf32, #tpu.memory_space<vmem>>, vector<1x128xf32>
    %8 = vector.broadcast %7 : vector<1x128xf32> to vector<64x128xf32>
    %9 = arith.addf %6, %8 : vector<64x128xf32>
    %c0_7 = arith.constant 0 : index
    %c0_8 = arith.constant 0 : index
    %10 = vector.load %arg10[%c0_7, %c0_8] : memref<64x128xf32, #tpu.memory_space<vmem>>, vector<64x128xf32>
    tpu.vector_store %arg10[%c0_7, %c0_8], %9 {strides = array<i32>} : memref<64x128xf32, #tpu.memory_space<vmem>>, vector<64x128xf32>,
    %c0_9 = arith.constant 0 : index
    %c0_10 = arith.constant 0 : index
    %11 = vector.load %arg5[%c0_9, %c0_10] : memref<128x128xf32, #tpu.memory_space<vmem>>, vector<128x128xf32>
    %c0_11 = arith.constant 0 : index
    %c0_12 = arith.constant 0 : index
    %12 = vector.load %arg9[%c0_11, %c0_12] : memref<8x128xf32, #tpu.memory_space<vmem>>, vector<8x128xf32>
    %c0_i32_13 = arith.constant 0 : i32
    %c8_i32 = arith.constant 8 : i32
    %13 = arith.muli %c0_i32_13, %c8_i32 : i32
    %14 = tpu.assume_multiple %13, 8 : i32
    %15 = arith.index_cast %14 : i32 to index
    %c0_14 = arith.constant 0 : index
    %16 = vector.load %arg10[%15, %c0_14] : memref<64x128xf32, #tpu.memory_space<vmem>>, vector<8x128xf32>
    %cst_15 = arith.constant dense<0.000000e+00> : vector<8x128xf32>
    %17 = tpu.matmul %12, %11, %cst_15 {dimension_numbers = #tpu.dot_dimension_numbers<[1], [0], [0], [1], [0, 0, 1, 1], [], []>} : vector<8x128xf32>, vector<128x128xf32>, vector<8x128xf32> -> vector<8x128xf32>
    %18 = arith.addf %16, %17 : vector<8x128xf32>
    %cst_16 = arith.constant 0.000000e+00 : f32
    %19 = vector.broadcast %cst_16 : f32 to vector<8x128xf32>
    %20 = arith.maximumf %18, %19 : vector<8x128xf32>
    %c1_i32 = arith.constant 1 : i32
    %c8_i32_17 = arith.constant 8 : i32
    %21 = arith.muli %c1_i32, %c8_i32_17 : i32
    %22 = tpu.assume_multiple %21, 8 : i32
    %23 = arith.index_cast %22 : i32 to index
    %c0_18 = arith.constant 0 : index
    %24 = vector.load %arg10[%23, %c0_18] : memref<64x128xf32, #tpu.memory_space<vmem>>, vector<8x128xf32>
    %cst_19 = arith.constant dense<0.000000e+00> : vector<8x128xf32>
    %25 = tpu.matmul %20, %11, %cst_19 {dimension_numbers = #tpu.dot_dimension_numbers<[1], [0], [0], [1], [0, 0, 1, 1], [], []>} : vector<8x128xf32>, vector<128x128xf32>, vector<8x128xf32> -> vector<8x128xf32>
    %26 = arith.addf %24, %25 : vector<8x128xf32>
    %cst_20 = arith.constant 0.000000e+00 : f32
    %27 = vector.broadcast %cst_20 : f32 to vector<8x128xf32>
    %28 = arith.maximumf %26, %27 : vector<8x128xf32>
    %c2_i32 = arith.constant 2 : i32
    %c8_i32_21 = arith.constant 8 : i32
    %29 = arith.muli %c2_i32, %c8_i32_21 : i32
    %30 = tpu.assume_multiple %29, 8 : i32
    %31 = arith.index_cast %30 : i32 to index
    %c0_22 = arith.constant 0 : index
    %32 = vector.load %arg10[%31, %c0_22] : memref<64x128xf32, #tpu.memory_space<vmem>>, vector<8x128xf32>
    %cst_23 = arith.constant dense<0.000000e+00> : vector<8x128xf32>
    %33 = tpu.matmul %28, %11, %cst_23 {dimension_numbers = #tpu.dot_dimension_numbers<[1], [0], [0], [1], [0, 0, 1, 1], [], []>} : vector<8x128xf32>, vector<128x128xf32>, vector<8x128xf32> -> vector<8x128xf32>
    %34 = arith.addf %32, %33 : vector<8x128xf32>
    %cst_24 = arith.constant 0.000000e+00 : f32
    %35 = vector.broadcast %cst_24 : f32 to vector<8x128xf32>
    %36 = arith.maximumf %34, %35 : vector<8x128xf32>
    %c3_i32 = arith.constant 3 : i32
    %c8_i32_25 = arith.constant 8 : i32
    %37 = arith.muli %c3_i32, %c8_i32_25 : i32
    %38 = tpu.assume_multiple %37, 8 : i32
    %39 = arith.index_cast %38 : i32 to index
    %c0_26 = arith.constant 0 : index
    %40 = vector.load %arg10[%39, %c0_26] : memref<64x128xf32, #tpu.memory_space<vmem>>, vector<8x128xf32>
    %cst_27 = arith.constant dense<0.000000e+00> : vector<8x128xf32>
    %41 = tpu.matmul %36, %11, %cst_27 {dimension_numbers = #tpu.dot_dimension_numbers<[1], [0], [0], [1], [0, 0, 1, 1], [], []>} : vector<8x128xf32>, vector<128x128xf32>, vector<8x128xf32> -> vector<8x128xf32>
    %42 = arith.addf %40, %41 : vector<8x128xf32>
    %cst_28 = arith.constant 0.000000e+00 : f32
    %43 = vector.broadcast %cst_28 : f32 to vector<8x128xf32>
    %44 = arith.maximumf %42, %43 : vector<8x128xf32>
    %c4_i32 = arith.constant 4 : i32
    %c8_i32_29 = arith.constant 8 : i32
    %45 = arith.muli %c4_i32, %c8_i32_29 : i32
    %46 = tpu.assume_multiple %45, 8 : i32
    %47 = arith.index_cast %46 : i32 to index
    %c0_30 = arith.constant 0 : index
    %48 = vector.load %arg10[%47, %c0_30] : memref<64x128xf32, #tpu.memory_space<vmem>>, vector<8x128xf32>
    %cst_31 = arith.constant dense<0.000000e+00> : vector<8x128xf32>
    %49 = tpu.matmul %44, %11, %cst_31 {dimension_numbers = #tpu.dot_dimension_numbers<[1], [0], [0], [1], [0, 0, 1, 1], [], []>} : vector<8x128xf32>, vector<128x128xf32>, vector<8x128xf32> -> vector<8x128xf32>
    %50 = arith.addf %48, %49 : vector<8x128xf32>
    %cst_32 = arith.constant 0.000000e+00 : f32
    %51 = vector.broadcast %cst_32 : f32 to vector<8x128xf32>
    %52 = arith.maximumf %50, %51 : vector<8x128xf32>
    %c5_i32 = arith.constant 5 : i32
    %c8_i32_33 = arith.constant 8 : i32
    %53 = arith.muli %c5_i32, %c8_i32_33 : i32
    %54 = tpu.assume_multiple %53, 8 : i32
    %55 = arith.index_cast %54 : i32 to index
    %c0_34 = arith.constant 0 : index
    %56 = vector.load %arg10[%55, %c0_34] : memref<64x128xf32, #tpu.memory_space<vmem>>, vector<8x128xf32>
    %cst_35 = arith.constant dense<0.000000e+00> : vector<8x128xf32>
    %57 = tpu.matmul %52, %11, %cst_35 {dimension_numbers = #tpu.dot_dimension_numbers<[1], [0], [0], [1], [0, 0, 1, 1], [], []>} : vector<8x128xf32>, vector<128x128xf32>, vector<8x128xf32> -> vector<8x128xf32>
    %58 = arith.addf %56, %57 : vector<8x128xf32>
    %cst_36 = arith.constant 0.000000e+00 : f32
    %59 = vector.broadcast %cst_36 : f32 to vector<8x128xf32>
    %60 = arith.maximumf %58, %59 : vector<8x128xf32>
    %c6_i32 = arith.constant 6 : i32
    %c8_i32_37 = arith.constant 8 : i32
    %61 = arith.muli %c6_i32, %c8_i32_37 : i32
    %62 = tpu.assume_multiple %61, 8 : i32
    %63 = arith.index_cast %62 : i32 to index
    %c0_38 = arith.constant 0 : index
    %64 = vector.load %arg10[%63, %c0_38] : memref<64x128xf32, #tpu.memory_space<vmem>>, vector<8x128xf32>
    %cst_39 = arith.constant dense<0.000000e+00> : vector<8x128xf32>
    %65 = tpu.matmul %60, %11, %cst_39 {dimension_numbers = #tpu.dot_dimension_numbers<[1], [0], [0], [1], [0, 0, 1, 1], [], []>} : vector<8x128xf32>, vector<128x128xf32>, vector<8x128xf32> -> vector<8x128xf32>
    %66 = arith.addf %64, %65 : vector<8x128xf32>
    %cst_40 = arith.constant 0.000000e+00 : f32
    %67 = vector.broadcast %cst_40 : f32 to vector<8x128xf32>
    %68 = arith.maximumf %66, %67 : vector<8x128xf32>
    %c7_i32 = arith.constant 7 : i32
    %c8_i32_41 = arith.constant 8 : i32
    %69 = arith.muli %c7_i32, %c8_i32_41 : i32
    %70 = tpu.assume_multiple %69, 8 : i32
    %71 = arith.index_cast %70 : i32 to index
    %c0_42 = arith.constant 0 : index
    %72 = vector.load %arg10[%71, %c0_42] : memref<64x128xf32, #tpu.memory_space<vmem>>, vector<8x128xf32>
    %cst_43 = arith.constant dense<0.000000e+00> : vector<8x128xf32>
    %73 = tpu.matmul %68, %11, %cst_43 {dimension_numbers = #tpu.dot_dimension_numbers<[1], [0], [0], [1], [0, 0, 1, 1], [], []>} : vector<8x128xf32>, vector<128x128xf32>, vector<8x128xf32> -> vector<8x128xf32>
    %74 = arith.addf %72, %73 : vector<8x128xf32>
    %cst_44 = arith.constant 0.000000e+00 : f32
    %75 = vector.broadcast %cst_44 : f32 to vector<8x128xf32>
    %76 = arith.maximumf %74, %75 : vector<8x128xf32>
    %c8_i32_45 = arith.constant 8 : i32
    %c0_46 = arith.constant 0 : index
    %c0_47 = arith.constant 0 : index
    %77 = vector.load %arg9[%c0_46, %c0_47] : memref<8x128xf32, #tpu.memory_space<vmem>>, vector<8x128xf32>
    tpu.vector_store %arg9[%c0_46, %c0_47], %76 {strides = array<i32>} : memref<8x128xf32, #tpu.memory_space<vmem>>, vector<8x128xf32>,
    %c0_i32_48 = arith.constant 0 : i32
    %78 = arith.cmpi eq, %arg1, %c0_i32_48 : i32
    %79 = arith.extui %78 : i1 to i32
    %c0_i32_49 = arith.constant 0 : i32
    %80 = arith.cmpi ne, %79, %c0_i32_49 : i32
    scf.if %80 {
      %c0_50 = arith.constant 0 : index
      %c0_51 = arith.constant 0 : index
      %81 = vector.load %arg9[%c0_50, %c0_51] : memref<8x128xf32, #tpu.memory_space<vmem>>, vector<8x128xf32>
      %c0_52 = arith.constant 0 : index
      %c0_53 = arith.constant 0 : index
      %82 = vector.load %arg6[%c0_52, %c0_53] : memref<128x128xf32, #tpu.memory_space<vmem>>, vector<128x128xf32>
      %cst_54 = arith.constant dense<0.000000e+00> : vector<8x128xf32>
      %83 = tpu.matmul %81, %82, %cst_54 {dimension_numbers = #tpu.dot_dimension_numbers<[1], [0], [0], [1], [0, 0, 1, 1], [], []>} : vector<8x128xf32>, vector<128x128xf32>, vector<8x128xf32> -> vector<8x128xf32>
      %c0_55 = arith.constant 0 : index
      %c0_56 = arith.constant 0 : index
      %84 = vector.load %arg7[%c0_55, %c0_56] : memref<1x128xf32, #tpu.memory_space<vmem>>, vector<1x128xf32>
      %85 = vector.broadcast %84 : vector<1x128xf32> to vector<8x128xf32>
      %86 = arith.addf %83, %85 : vector<8x128xf32>
      %c0_57 = arith.constant 0 : index
      %c0_58 = arith.constant 0 : index
      %87 = vector.load %arg8[%c0_57, %c0_58] : memref<8x128xf32, #tpu.memory_space<vmem>>, vector<8x128xf32>
      tpu.vector_store %arg8[%c0_57, %c0_58], %86 {strides = array<i32>} : memref<8x128xf32, #tpu.memory_space<vmem>>, vector<8x128xf32>,
    } else {
    }
    return
  }
  func.func @transform_0(%arg0: i32, %arg1: i32) -> (i32, i32, i32) {
    %c0_i32 = arith.constant 0 : i32
    %c0_i32_0 = arith.constant 0 : i32
    return %arg0, %arg1, %c0_i32 : i32, i32, i32
  }
  func.func @transform_1(%arg0: i32, %arg1: i32) -> (i32, i32) {
    %c0_i32 = arith.constant 0 : i32
    %c0_i32_0 = arith.constant 0 : i32
    %c0_i32_1 = arith.constant 0 : i32
    return %c0_i32, %c0_i32_0 : i32, i32
  }
  func.func @transform_2(%arg0: i32, %arg1: i32) -> (i32, i32) {
    %c0_i32 = arith.constant 0 : i32
    %c0_i32_0 = arith.constant 0 : i32
    %c0_i32_1 = arith.constant 0 : i32
    return %c0_i32, %c0_i32_0 : i32, i32
  }
  func.func @transform_3(%arg0: i32, %arg1: i32) -> (i32, i32) {
    %c0_i32 = arith.constant 0 : i32
    %c0_i32_0 = arith.constant 0 : i32
    %c0_i32_1 = arith.constant 0 : i32
    return %c0_i32, %c0_i32_0 : i32, i32
  }
  func.func @transform_4(%arg0: i32, %arg1: i32) -> (i32, i32) {
    %c0_i32 = arith.constant 0 : i32
    %c0_i32_0 = arith.constant 0 : i32
    %c0_i32_1 = arith.constant 0 : i32
    return %c0_i32, %c0_i32_0 : i32, i32
  }
  func.func @transform_5(%arg0: i32, %arg1: i32) -> (i32, i32) {
    %c0_i32 = arith.constant 0 : i32
    %c0_i32_0 = arith.constant 0 : i32
    %c0_i32_1 = arith.constant 0 : i32
    return %c0_i32, %c0_i32_0 : i32, i32
  }
  func.func @transform_6(%arg0: i32, %arg1: i32) -> (i32, i32) {
    %c0_i32 = arith.constant 0 : i32
    %c0_i32_0 = arith.constant 0 : i32
    return %arg0, %c0_i32 : i32, i32
  }
}

</mosaic_0001>

<bundles_post_ra>
// kernel: tpu_custom_call.1
= control target key start
LH: loop header
LB: loop body
LE: loop exit
PB: predicated region body
PF: predicated region fallthrough
CT: control target
= control target key end

     0   :  { %11 = vsyncpa [#allocation5], 0  ;;  %s2058_s0 = inlined_call_operand.vmem [shape: f32[1,64,16], index: 0, kind: input, shape index: {}]   ;;  %s2059_s1 = inlined_call_operand.vmem [shape: f32[16,128], index: 1, kind: input, shape index: {}]   ;;  %s2060_s2 = inlined_call_operand.vmem [shape: f32[1,128], index: 2, kind: input, shape index: {}]   ;;  %s2061_s3 = inlined_call_operand.hbm [shape: f32[128,128], index: 3, kind: input, shape index: {}]   ;;  %s2062_s4 = inlined_call_operand.hbm [shape: f32[128,128], index: 4, kind: input, shape index: {}]   ;;  %s2063_s5 = inlined_call_operand.vmem [shape: f32[1,128], index: 5, kind: input, shape index: {}]   ;;  %s2064_s6 = inlined_call_operand.hbm [shape: f32[8,128], index: 6, kind: output, shape index: {}]  }
   0x1   :  { %12 = vsyncpa [#allocation8], 0 }
   0x2   :  { %13 = vsyncpa [#allocation6], 0  ;;  %s1739_s21 = smov [#allocation4]   ;;  %s1667_s25 = scalar_lea.hbm %s2061_s3, 2048 }
   0x3   :  { %s25_s22 = sshll.u32 %s1739_s21, 4  ;;  %p1668_p0 = scmp.ne.s32.totalorder %s2061_s3, %s1667_s25  ;;  %s26_s22 = int_to_ptr.vmem [resolvable:$true] %s25_s22 }
   0x4   :  { %p1671_p1 = scmp.lt.u32.totalorder %s1667_s25, %s2061_s3 }
   0x6   :  { %p1673_p2 = pnand %p1671_p1, %p1668_p0 }
   0x8   :  { %1676 = shalt.err (!%p1673_p2)
}
   0x9   :  { %s1677_s30 = scalar_lea.vmem %s26_s22, 2048  ;;  %p1682_p4 = scmp.lt.s32.totalorder %s26_s22, %s26_s22 }
   0xa   :  { %p1678_p3 = scmp.ne.s32.totalorder %s26_s22, %s1677_s30  ;;  %p1683_p5 = scmp.lt.s32.totalorder %s1677_s30, %s1677_s30 }
   0xc   :  { %p1684_p6 = por %p1683_p5, %p1682_p4 }
   0xe   :  { %p1685_p7 = pnand %p1684_p6, %p1678_p3 }
  0x10   :  { %1688 = shalt.err (!%p1685_p7)
}
  0x11   :  { %s1740_s7 = smov 128   ;;  %s1741_s8 = smov 8  }
  0x12   :  { %31 = dma.hbm_to_vmem [thread:$0]  %s2061_s3, 2048, %s26_s22, [#allocation5], %s1740_s7, %s1740_s7, %s1741_s8  }
  0x13   :  { %s1742_s11 = smov [#allocation7]   ;;  %s1689_s15 = scalar_lea.hbm %s2062_s4, 2048 }
  0x14   :  { %s37_s12 = sshll.u32 %s1742_s11, 4  ;;  %p1690_p8 = scmp.ne.s32.totalorder %s2062_s4, %s1689_s15  ;;  %s38_s12 = int_to_ptr.vmem [resolvable:$true] %s37_s12 }
  0x15   :  { %p1693_p9 = scmp.lt.u32.totalorder %s1689_s15, %s2062_s4 }
  0x17   :  { %p1695_p10 = pnand %p1693_p9, %p1690_p8 }
  0x19   :  { %1698 = shalt.err (!%p1695_p10)
}
  0x1a   :  { %s1699_s20 = scalar_lea.vmem %s38_s12, 2048  ;;  %p1704_p12 = scmp.lt.s32.totalorder %s38_s12, %s38_s12 }
  0x1b   :  { %p1700_p11 = scmp.ne.s32.totalorder %s38_s12, %s1699_s20  ;;  %p1705_p13 = scmp.lt.s32.totalorder %s1699_s20, %s1699_s20 }
  0x1d   :  { %p1706_p0 = por %p1705_p13, %p1704_p12 }
  0x1f   :  { %p1707_p1 = pnand %p1706_p0, %p1700_p11 }
  0x21   :  { %1710 = shalt.err (!%p1707_p1)
}
  0x22   :  { %43 = dma.hbm_to_vmem [thread:$0]  %s2062_s4, 2048, %s38_s12, [#allocation8], %s1740_s7, %s1740_s7, %s1741_s8  }
  0x23   :  { %1733 = dma.done.wait [#allocation5], 2048  }
  0x24   :  { %1734 = vsyncadd [#allocation5], 4294965248 }
  0x25   :  { %1735 = dma.done.wait [#allocation8], 2048  }
  0x26   :  { %1736 = vsyncadd [#allocation8], 4294965248  ;;  %v1743_v0 = vmov 0.0|0.0   ;;  %vm1744_vm0 = vmmov 0   ;;  %v1745_v1 = vmov 0.0   ;;  %v212_v2 = vld [vmem:[#allocation4] sm:$0xff] }
  0x27   :  { %1443 = vmatprep.subr.bf16.mxu1 %v1743_v0  ;;  %1156 = vmatprep.mubr.msk.f32.mxu1 %vm1744_vm0, %v1745_v1  ;;  %v213_v3 = vld [vmem:[#allocation4 + $0x8] sm:$0xff]  ;;  %v214_v4 = vld [vmem:[#allocation4 + $0x10] sm:$0xff]  ;;  %v215_v6 = vld [vmem:[#allocation4 + $0x18] sm:$0xff]  ;;  %vm74_vm1 = vcmask 130048   ;;  %s1746_s18 = smov [#allocation9]  }
  0x28   :  { %v1809_v5 = vpack.c.bf16 %v213_v3, %v212_v2  ;;  %v1812_v7 = vpack.c.bf16 %v215_v6, %v214_v4  ;;  %v216_v8 = vld [vmem:[#allocation4 + $0x20] sm:$0xff]  ;;  %v217_v9 = vld [vmem:[#allocation4 + $0x28] sm:$0xff]  ;;  %v218_v15 = vld [vmem:[#allocation4 + $0x30] sm:$0xff]  ;;  %s925_s19 = sshll.u32 %s1746_s18, 4  ;;  %s926_s19 = int_to_ptr.vmem [resolvable:$true] %s925_s19 }
  0x29   :  { %v65_v10 = vld [vmem:[%s2059_s1] sm:$0xff]  ;;  %v66_v11 = vld [vmem:[%s2059_s1 + $0x8] sm:$0xff]  ;;  %v1826_v14 = vpack.c.bf16 %v217_v9, %v216_v8  ;;  %v219_v16 = vld [vmem:[#allocation4 + $0x38] sm:$0xff]  ;;  %s1711_s20 = scalar_lea.vmem %s926_s19, 128  ;;  %p1716_p3 = scmp.lt.s32.totalorder %s926_s19, %s926_s19 }
  0x2a   :  { %1445 = vmatpush3.bf16.msra.mxu1 %v1809_v5  ;;  %v1439_v12 = vpack.c.bf16 %v66_v11, %v65_v10  ;;  %v57_v13 = vld [vmem:[%s2058_s0] sm:$0xff]  ;;  %v58_v17 = vld [vmem:[%s2058_s0 + $0x8] sm:$0xff]  ;;  %v59_v18 = vld [vmem:[%s2058_s0 + $0x10] sm:$0xff]  ;;  %v1837_v19 = vpack.c.bf16 %v219_v16, %v218_v15  ;;  %p1712_p2 = scmp.ne.s32.totalorder %s926_s19, %s1711_s20  ;;  %p1717_p4 = scmp.lt.s32.totalorder %s1711_s20, %s1711_s20 }
  0x2b   :  { %1446 = vmatprep.subr.bf16.mxu1 %v1743_v0  ;;  %1112 = vmatprep.mubr.msk.f32.mxu0 %vm74_vm1, %v57_v13  ;;  %v220_v20 = vld [vmem:[#allocation4 + $0x40] sm:$0xff]  ;;  %v221_v21 = vld [vmem:[#allocation4 + $0x48] sm:$0xff]  ;;  %v60_v22 = vld [vmem:[%s2058_s0 + $0x18] sm:$0xff] }
  0x2c   :  { %1440 = vmatprep.subr.bf16.mxu0 %v1439_v12  ;;  %v61_v23 = vld [vmem:[%s2058_s0 + $0x20] sm:$0xff]  ;;  %v1851_v24 = vpack.c.bf16 %v221_v21, %v220_v20  ;;  %v222_v25 = vld [vmem:[#allocation4 + $0x50] sm:$0xff]  ;;  %v223_v26 = vld [vmem:[#allocation4 + $0x58] sm:$0xff]  ;;  %p1718_p5 = por %p1717_p4, %p1716_p3 }
  0x2d   :  { %1442 = vmatpush3.bf16.msra.mxu0 %v1439_v12  ;;  %v1859_v27 = vpack.c.bf16 %v223_v26, %v222_v25  ;;  %v224_v28 = vld [vmem:[#allocation4 + $0x60] sm:$0xff]  ;;  %v225_v29 = vld [vmem:[#allocation4 + $0x68] sm:$0xff]  ;;  %v226_v31 = vld [vmem:[#allocation4 + $0x70] sm:$0xff] }
  0x2e   :  { %1448 = vmatpush3.bf16.msra.mxu1 %v1812_v7  ;;  %1467 = vmatprep.subr.bf16.mxu0 %v1743_v0  ;;  %v1865_v30 = vpack.c.bf16 %v225_v29, %v224_v28  ;;  %v227_v32 = vld [vmem:[#allocation4 + $0x78] sm:$0xff]  ;;  %v62_v34 = vld [vmem:[%s2058_s0 + $0x28] sm:$0xff]  ;;  %v63_v35 = vld [vmem:[%s2058_s0 + $0x30] sm:$0xff]  ;;  %p1719_p6 = pnand %p1718_p5, %p1712_p2 }
  0x2f   :  { %1449 = vmatprep.subr.bf16.mxu1 %v1743_v0  ;;  %v1871_v33 = vpack.c.bf16 %v227_v32, %v226_v31  ;;  %v64_v36 = vld [vmem:[%s2058_s0 + $0x38] sm:$0xff]  ;;  %v1922_v41 = vld [vmem:[%s2060_s2] ss:$0 sm:$0xff]  ;;  %v826_v15 = vld [vmem:[#allocation7 + $0x8] sm:$0xff] }
  0x30   :  { %1113 = vmatmul.mubr.msk.f32.vlgmr.msra.gmra.mrb[0].mxu0 %vm74_vm1, %v58_v17  ;;  %v827_v16 = vld [vmem:[#allocation7 + $0x10] sm:$0xff]  ;;  %v829_v20 = vld [vmem:[#allocation7 + $0x20] sm:$0xff]  ;;  %v830_v21 = vld [vmem:[#allocation7 + $0x28] sm:$0xff] }
  0x31   :  { %1469 = vmatpush3.bf16.msra.mxu0 %v1809_v5  ;;  %1115 = vmatprep.mubr.msk.f32.mxu0 %vm74_vm1, %v59_v18  ;;  %v828_v18 = vld [vmem:[#allocation7 + $0x18] sm:$0xff]  ;;  %v834_v26 = vld [vmem:[#allocation7 + $0x48] sm:$0xff]  ;;  %v835_v28 = vld [vmem:[#allocation7 + $0x50] sm:$0xff] }
  0x32   :  { %1451 = vmatpush3.bf16.msra.mxu1 %v1826_v14  ;;  %1470 = vmatprep.subr.bf16.mxu0 %v1743_v0  ;;  %v836_v29 = vld [vmem:[#allocation7 + $0x58] sm:$0xff]  ;;  %v837_v31 = vld [vmem:[#allocation7 + $0x60] sm:$0xff]  ;;  %v838_v32 = vld [vmem:[#allocation7 + $0x68] sm:$0xff] }
  0x33   :  { %1452 = vmatprep.subr.bf16.mxu1 %v1743_v0 }
  0x34   :  { %1116 = vmatmul.mubr.msk.f32.gmra.mrb[2].mxu0 %vm74_vm1, %v60_v22  ;;  %v1642_v22 = vpack.c.bf16 %v830_v21, %v829_v20 }
  0x35   :  { %1472 = vmatpush3.bf16.msra.mxu0 %v1812_v7  ;;  %1118 = vmatprep.mubr.msk.f32.mxu0 %vm74_vm1, %v61_v23  ;;  %v831_v23 = vld [vmem:[#allocation7 + $0x30] sm:$0xff] }
  0x36   :  { %1454 = vmatpush3.bf16.msra.mxu1 %v1837_v19  ;;  %1473 = vmatprep.subr.bf16.mxu0 %v1743_v0 }
  0x37   :  { %1455 = vmatprep.subr.bf16.mxu1 %v1743_v0 }
  0x38   :  { %1119 = vmatmul.mubr.msk.f32.gmra.mrb[4].mxu0 %vm74_vm1, %v62_v34 }
  0x39   :  { %1475 = vmatpush3.bf16.msra.mxu0 %v1826_v14  ;;  %1121 = vmatprep.mubr.msk.f32.mxu0 %vm74_vm1, %v63_v35 }
  0x3a   :  { %1457 = vmatpush3.bf16.msra.mxu1 %v1851_v24  ;;  %1476 = vmatprep.subr.bf16.mxu0 %v1743_v0 }
  0x3b   :  { %1458 = vmatprep.subr.bf16.mxu1 %v1743_v0 }
  0x3c   :  { %1122 = vmatmul.mubr.msk.f32.gmra.mrb[6].mxu0 %vm74_vm1, %v64_v36 }
  0x3d   :  { %1478 = vmatpush3.bf16.msra.mxu0 %v1837_v19  ;;  %1191 = vmatprep.mubr.msk.f32.mxu0 %vm1744_vm0, %v1745_v1 }
  0x3e   :  { %1460 = vmatpush3.bf16.msra.mxu1 %v1859_v27  ;;  %1479 = vmatprep.subr.bf16.mxu0 %v1743_v0 }
  0x3f   :  { %1461 = vmatprep.subr.bf16.mxu1 %v1743_v0 }
  0x41   :  { %1481 = vmatpush3.bf16.msra.mxu0 %v1851_v24 }
  0x42   :  { %1463 = vmatpush3.bf16.msra.mxu1 %v1865_v30  ;;  %1482 = vmatprep.subr.bf16.mxu0 %v1743_v0 }
  0x43   :  { %1464 = vmatprep.subr.bf16.mxu1 %v1743_v0 }
  0x45   :  { %1484 = vmatpush3.bf16.msra.mxu0 %v1859_v27 }
  0x46   :  { %1466 = vmatpush3.bf16.msra.mxu1 %v1871_v33  ;;  %1485 = vmatprep.subr.bf16.mxu0 %v1743_v0 }
  0x47   :  { %1491 = vmatprep.subr.bf16.mxu1 %v1743_v0 }
  0x49   :  { %1157 = vmatmul.mubr.f32.vlgmr.msra.gmra.mrb[0].mxu1 %v1745_v1  ;;  %1487 = vmatpush3.bf16.msra.mxu0 %v1865_v30 }
  0x4a   :  { %1493 = vmatpush3.bf16.msra.mxu1 %v1809_v5  ;;  %1226 = vmatprep.mubr.msk.f32.mxu1 %vm1744_vm0, %v1745_v1 }
  0x4b   :  { %1494 = vmatprep.subr.bf16.mxu1 %v1743_v0  ;;  %1488 = vmatprep.subr.bf16.mxu0 %v1743_v0 }
  0x4d   :  { %1490 = vmatpush3.bf16.msra.mxu0 %v1871_v33 }
  0x4e   :  { %1496 = vmatpush3.bf16.msra.mxu1 %v1812_v7  ;;  %1515 = vmatprep.subr.bf16.mxu0 %v1743_v0 }
  0x4f   :  { %1497 = vmatprep.subr.bf16.mxu1 %v1743_v0 }
  0x52   :  { %1499 = vmatpush3.bf16.msra.mxu1 %v1826_v14 }
  0x53   :  { %1500 = vmatprep.subr.bf16.mxu1 %v1743_v0 }
  0x56   :  { %1502 = vmatpush3.bf16.msra.mxu1 %v1837_v19 }
  0x57   :  { %1503 = vmatprep.subr.bf16.mxu1 %v1743_v0 }
  0x5a   :  { %1505 = vmatpush3.bf16.msra.mxu1 %v1851_v24 }
  0x5b   :  { %1506 = vmatprep.subr.bf16.mxu1 %v1743_v0 }
  0x5e   :  { %1508 = vmatpush3.bf16.msra.mxu1 %v1859_v27 }
  0x5f   :  { %1509 = vmatprep.subr.bf16.mxu1 %v1743_v0 }
  0x62   :  { %1511 = vmatpush3.bf16.msra.mxu1 %v1865_v30 }
  0x63   :  { %1512 = vmatprep.subr.bf16.mxu1 %v1743_v0 }
  0x66   :  { %1514 = vmatpush3.bf16.msra.mxu1 %v1871_v33 }
  0x67   :  { %1539 = vmatprep.subr.bf16.mxu1 %v1743_v0 }
 0x103   :  { %v1114_v37 = vpop.f32.mrb[0].mxu0 }
 0x104   :  { %v165_v38 = vpop.f32.mrb[1].mxu0  ;;  %v171_v51 = vadd.f32 %v1114_v37, %v1922_v41 }
 0x105   :  { %v166_v42 = vadd.f32 %v1922_v41, %v165_v38 }
 0x107   :  { %v1917_v39 = vpop.f32.mrb[2].mxu0 }
 0x108   :  { %v175_v40 = vpop.f32.mrb[3].mxu0  ;;  %v181_v61 = vadd.f32 %v1917_v39, %v1922_v41  ;;  %v839_v39 = vld [vmem:[#allocation7 + $0x70] sm:$0xff] }
 0x109   :  { %v176_v56 = vadd.f32 %v1922_v41, %v175_v40  ;;  %v840_v40 = vld [vmem:[#allocation7 + $0x78] sm:$0xff] }
 0x10b   :  { %v1943_v47 = vpop.f32.mrb[4].mxu0 }
 0x10c   :  { %v1945_v48 = vpop.f32.mrb[5].mxu0 }
 0x10d   :  { %v186_v4 = vadd.f32 %v1922_v41, %v1945_v48 }
 0x10f   :  { %v1947_v49 = vpop.f32.mrb[6].mxu0 }
 0x110   :  { %v1949_v50 = vpop.f32.mrb[7].mxu0 }
 0x111   :  { %v196_v34 = vadd.f32 %v1922_v41, %v1949_v50 }
 0x11c   :  { %v296_v43 = vpop.f32.mrb[0].mxu1 }
 0x11d   :  { %v300_v44 = vadd.f32 %v296_v43, %v166_v42  ;;  %v1158_v45 = vpop.f32.mrb[1].mxu1  ;;  %v1657_v42 = vpack.c.bf16 %v840_v40, %v839_v39  ;;  %v201_v43 = vadd.f32 %v1947_v49, %v1922_v41 }
 0x11f   :  { %v301_v46 = vmax.f32 %v300_v44, 0.0 }
 0x121   :  { %1192 = vmatmul.mubr.f32.vlgmr.msra.gmra.mrb[8].mxu0 %v301_v46 }
 0x122   :  { %1517 = vmatpush3.bf16.msra.mxu0 %v1809_v5  ;;  %1261 = vmatprep.mubr.msk.f32.mxu0 %vm1744_vm0, %v1745_v1 }
 0x123   :  { %1518 = vmatprep.subr.bf16.mxu0 %v1743_v0 }
 0x126   :  { %1520 = vmatpush3.bf16.msra.mxu0 %v1812_v7 }
 0x127   :  { %1521 = vmatprep.subr.bf16.mxu0 %v1743_v0 }
 0x12a   :  { %1523 = vmatpush3.bf16.msra.mxu0 %v1826_v14 }
 0x12b   :  { %1524 = vmatprep.subr.bf16.mxu0 %v1743_v0 }
 0x12e   :  { %1526 = vmatpush3.bf16.msra.mxu0 %v1837_v19 }
 0x12f   :  { %1527 = vmatprep.subr.bf16.mxu0 %v1743_v0 }
 0x132   :  { %1529 = vmatpush3.bf16.msra.mxu0 %v1851_v24 }
 0x133   :  { %1530 = vmatprep.subr.bf16.mxu0 %v1743_v0 }
 0x136   :  { %1532 = vmatpush3.bf16.msra.mxu0 %v1859_v27 }
 0x137   :  { %1533 = vmatprep.subr.bf16.mxu0 %v1743_v0 }
 0x13a   :  { %1535 = vmatpush3.bf16.msra.mxu0 %v1865_v30 }
 0x13b   :  { %1536 = vmatprep.subr.bf16.mxu0 %v1743_v0 }
 0x13e   :  { %1538 = vmatpush3.bf16.msra.mxu0 %v1871_v33 }
 0x13f   :  { %1563 = vmatprep.subr.bf16.mxu0 %v1743_v0 }
 0x1f4   :  { %v370_v52 = vpop.f32.mrb[8].mxu0 }
 0x1f5   :  { %v374_v53 = vadd.f32 %v370_v52, %v171_v51  ;;  %v1193_v54 = vpop.f32.mrb[9].mxu0 }
 0x1f7   :  { %v375_v55 = vmax.f32 %v374_v53, 0.0 }
 0x1f9   :  { %1227 = vmatmul.mubr.f32.vlgmr.msra.gmra.mrb[2].mxu1 %v375_v55 }
 0x1fa   :  { %1541 = vmatpush3.bf16.msra.mxu1 %v1809_v5  ;;  %1296 = vmatprep.mubr.msk.f32.mxu1 %vm1744_vm0, %v1745_v1 }
 0x1fb   :  { %1542 = vmatprep.subr.bf16.mxu1 %v1743_v0 }
 0x1fe   :  { %1544 = vmatpush3.bf16.msra.mxu1 %v1812_v7 }
 0x1ff   :  { %1545 = vmatprep.subr.bf16.mxu1 %v1743_v0 }
 0x202   :  { %1547 = vmatpush3.bf16.msra.mxu1 %v1826_v14 }
 0x203   :  { %1548 = vmatprep.subr.bf16.mxu1 %v1743_v0 }
 0x206   :  { %1550 = vmatpush3.bf16.msra.mxu1 %v1837_v19 }
 0x207   :  { %1551 = vmatprep.subr.bf16.mxu1 %v1743_v0 }
 0x20a   :  { %1553 = vmatpush3.bf16.msra.mxu1 %v1851_v24 }
 0x20b   :  { %1554 = vmatprep.subr.bf16.mxu1 %v1743_v0 }
 0x20e   :  { %1556 = vmatpush3.bf16.msra.mxu1 %v1859_v27 }
 0x20f   :  { %1557 = vmatprep.subr.bf16.mxu1 %v1743_v0 }
 0x212   :  { %1559 = vmatpush3.bf16.msra.mxu1 %v1865_v30 }
 0x213   :  { %1560 = vmatprep.subr.bf16.mxu1 %v1743_v0 }
 0x216   :  { %1562 = vmatpush3.bf16.msra.mxu1 %v1871_v33 }
 0x217   :  { %1587 = vmatprep.subr.bf16.mxu1 %v1743_v0 }
 0x2cc   :  { %v444_v57 = vpop.f32.mrb[2].mxu1 }
 0x2cd   :  { %v448_v58 = vadd.f32 %v444_v57, %v176_v56  ;;  %v1228_v59 = vpop.f32.mrb[3].mxu1 }
 0x2cf   :  { %v449_v60 = vmax.f32 %v448_v58, 0.0 }
 0x2d1   :  { %1262 = vmatmul.mubr.f32.vlgmr.msra.gmra.mrb[10].mxu0 %v449_v60 }
 0x2d2   :  { %1565 = vmatpush3.bf16.msra.mxu0 %v1809_v5  ;;  %1331 = vmatprep.mubr.msk.f32.mxu0 %vm1744_vm0, %v1745_v1 }
 0x2d3   :  { %1566 = vmatprep.subr.bf16.mxu0 %v1743_v0 }
 0x2d6   :  { %1568 = vmatpush3.bf16.msra.mxu0 %v1812_v7 }
 0x2d7   :  { %1569 = vmatprep.subr.bf16.mxu0 %v1743_v0 }
 0x2da   :  { %1571 = vmatpush3.bf16.msra.mxu0 %v1826_v14 }
 0x2db   :  { %1572 = vmatprep.subr.bf16.mxu0 %v1743_v0 }
 0x2de   :  { %1574 = vmatpush3.bf16.msra.mxu0 %v1837_v19 }
 0x2df   :  { %1575 = vmatprep.subr.bf16.mxu0 %v1743_v0 }
 0x2e2   :  { %1577 = vmatpush3.bf16.msra.mxu0 %v1851_v24 }
 0x2e3   :  { %1578 = vmatprep.subr.bf16.mxu0 %v1743_v0 }
 0x2e6   :  { %1580 = vmatpush3.bf16.msra.mxu0 %v1859_v27 }
 0x2e7   :  { %1581 = vmatprep.subr.bf16.mxu0 %v1743_v0 }
 0x2ea   :  { %1583 = vmatpush3.bf16.msra.mxu0 %v1865_v30 }
 0x2eb   :  { %1584 = vmatprep.subr.bf16.mxu0 %v1743_v0 }
 0x2ee   :  { %1586 = vmatpush3.bf16.msra.mxu0 %v1871_v33 }
 0x2ef   :  { %1611 = vmatprep.subr.bf16.mxu0 %v1743_v0 }
 0x3a4   :  { %v518_v62 = vpop.f32.mrb[10].mxu0 }
 0x3a5   :  { %v522_v63 = vadd.f32 %v518_v62, %v181_v61  ;;  %v1263_v2 = vpop.f32.mrb[11].mxu0 }
 0x3a7   :  { %v523_v3 = vmax.f32 %v522_v63, 0.0 }
 0x3a9   :  { %1297 = vmatmul.mubr.f32.vlgmr.msra.gmra.mrb[4].mxu1 %v523_v3 }
 0x3aa   :  { %1589 = vmatpush3.bf16.msra.mxu1 %v1809_v5  ;;  %1366 = vmatprep.mubr.msk.f32.mxu1 %vm1744_vm0, %v1745_v1 }
 0x3ab   :  { %1590 = vmatprep.subr.bf16.mxu1 %v1743_v0 }
 0x3ae   :  { %1592 = vmatpush3.bf16.msra.mxu1 %v1812_v7 }
 0x3af   :  { %1593 = vmatprep.subr.bf16.mxu1 %v1743_v0 }
 0x3b2   :  { %1595 = vmatpush3.bf16.msra.mxu1 %v1826_v14 }
 0x3b3   :  { %1596 = vmatprep.subr.bf16.mxu1 %v1743_v0 }
 0x3b6   :  { %1598 = vmatpush3.bf16.msra.mxu1 %v1837_v19 }
 0x3b7   :  { %1599 = vmatprep.subr.bf16.mxu1 %v1743_v0 }
 0x3ba   :  { %1601 = vmatpush3.bf16.msra.mxu1 %v1851_v24 }
 0x3bb   :  { %1602 = vmatprep.subr.bf16.mxu1 %v1743_v0 }
 0x3be   :  { %1604 = vmatpush3.bf16.msra.mxu1 %v1859_v27 }
 0x3bf   :  { %1605 = vmatprep.subr.bf16.mxu1 %v1743_v0 }
 0x3c2   :  { %1607 = vmatpush3.bf16.msra.mxu1 %v1865_v30 }
 0x3c3   :  { %1608 = vmatprep.subr.bf16.mxu1 %v1743_v0 }
 0x3c6   :  { %1610 = vmatpush3.bf16.msra.mxu1 %v1871_v33 }
 0x3c7   :  { %1635 = vmatprep.subr.bf16.mxu1 %v1743_v0 }
 0x47c   :  { %v592_v6 = vpop.f32.mrb[4].mxu1 }
 0x47d   :  { %v596_v8 = vadd.f32 %v592_v6, %v186_v4  ;;  %v1298_v9 = vpop.f32.mrb[5].mxu1 }
 0x47f   :  { %v597_v10 = vmax.f32 %v596_v8, 0.0 }
 0x481   :  { %1332 = vmatmul.mubr.f32.vlgmr.msra.gmra.mrb[12].mxu0 %v597_v10 }
 0x482   :  { %1613 = vmatpush3.bf16.msra.mxu0 %v1809_v5  ;;  %1401 = vmatprep.mubr.msk.f32.mxu0 %vm1744_vm0, %v1745_v1  ;;  %v191_v5 = vadd.f32 %v1943_v47, %v1922_v41 }
 0x483   :  { %1614 = vmatprep.subr.bf16.mxu0 %v1743_v0 }
 0x486   :  { %1616 = vmatpush3.bf16.msra.mxu0 %v1812_v7 }
 0x487   :  { %1617 = vmatprep.subr.bf16.mxu0 %v1743_v0 }
 0x48a   :  { %1619 = vmatpush3.bf16.msra.mxu0 %v1826_v14  ;;  %v825_v14 = vld [vmem:[#allocation7] sm:$0xff] }
 0x48b   :  { %1620 = vmatprep.subr.bf16.mxu0 %v1743_v0  ;;  %v1636_v17 = vpack.c.bf16 %v826_v15, %v825_v14 }
 0x48e   :  { %1622 = vmatpush3.bf16.msra.mxu0 %v1837_v19  ;;  %v1639_v19 = vpack.c.bf16 %v828_v18, %v827_v16 }
 0x48f   :  { %1623 = vmatprep.subr.bf16.mxu0 %v1743_v0 }
 0x492   :  { %1625 = vmatpush3.bf16.msra.mxu0 %v1851_v24  ;;  %v832_v24 = vld [vmem:[#allocation7 + $0x38] sm:$0xff] }
 0x493   :  { %1626 = vmatprep.subr.bf16.mxu0 %v1743_v0  ;;  %v1645_v25 = vpack.c.bf16 %v832_v24, %v831_v23 }
 0x496   :  { %1628 = vmatpush3.bf16.msra.mxu0 %v1859_v27 }
 0x497   :  { %1629 = vmatprep.subr.bf16.mxu0 %v1743_v0 }
 0x49a   :  { %1631 = vmatpush3.bf16.msra.mxu0 %v1865_v30  ;;  %v1651_v30 = vpack.c.bf16 %v836_v29, %v835_v28 }
 0x49b   :  { %1632 = vmatprep.subr.bf16.mxu0 %v1743_v0 }
 0x49e   :  { %1634 = vmatpush3.bf16.msra.mxu0 %v1871_v33  ;;  %v1654_v33 = vpack.c.bf16 %v838_v32, %v837_v31 }
 0x554   :  { %v666_v7 = vpop.f32.mrb[12].mxu0 }
 0x555   :  { %v670_v11 = vadd.f32 %v666_v7, %v191_v5  ;;  %v1333_v12 = vpop.f32.mrb[13].mxu0 }
 0x557   :  { %v671_v13 = vmax.f32 %v670_v11, 0.0 }
 0x559   :  { %1367 = vmatmul.mubr.f32.vlgmr.msra.gmra.mrb[6].mxu1 %v671_v13 }
 0x55a   :  { %1436 = vmatprep.mubr.msk.f32.mxu1 %vm1744_vm0, %v1745_v1  ;;  %1637 = vmatpush3.bf16.msra.mxu1 %v1636_v17  ;;  %v833_v1 = vld [vmem:[#allocation7 + $0x40] sm:$0xff] }
 0x55b   :  { %1638 = vmatprep.subr.bf16.mxu1 %v1743_v0  ;;  %v1648_v27 = vpack.c.bf16 %v834_v26, %v833_v1 }
 0x55e   :  { %1640 = vmatpush3.bf16.msra.mxu1 %v1639_v19 }
 0x55f   :  { %1641 = vmatprep.subr.bf16.mxu1 %v1743_v0 }
 0x562   :  { %1643 = vmatpush3.bf16.msra.mxu1 %v1642_v22 }
 0x563   :  { %1644 = vmatprep.subr.bf16.mxu1 %v1743_v0 }
 0x566   :  { %1646 = vmatpush3.bf16.msra.mxu1 %v1645_v25 }
 0x567   :  { %1647 = vmatprep.subr.bf16.mxu1 %v1743_v0 }
 0x56a   :  { %1649 = vmatpush3.bf16.msra.mxu1 %v1648_v27 }
 0x56b   :  { %1650 = vmatprep.subr.bf16.mxu1 %v1743_v0 }
 0x56e   :  { %1652 = vmatpush3.bf16.msra.mxu1 %v1651_v30 }
 0x56f   :  { %1653 = vmatprep.subr.bf16.mxu1 %v1743_v0 }
 0x572   :  { %1655 = vmatpush3.bf16.msra.mxu1 %v1654_v33 }
 0x573   :  { %1656 = vmatprep.subr.bf16.mxu1 %v1743_v0  ;;  %v944_v0 = vld [vmem:[%s2063_s5] ss:$0 sm:$0xff] }
 0x576   :  { %1658 = vmatpush3.bf16.msra.mxu1 %v1657_v42 }
 0x62c   :  { %v740_v35 = vpop.f32.mrb[6].mxu1 }
 0x62d   :  { %v744_v36 = vadd.f32 %v740_v35, %v196_v34  ;;  %v1368_v37 = vpop.f32.mrb[7].mxu1 }
 0x62f   :  { %v745_v38 = vmax.f32 %v744_v36, 0.0 }
 0x631   :  { %1402 = vmatmul.mubr.f32.vlgmr.msra.gmra.mrb[14].mxu0 %v745_v38 }
 0x704   :  { %v814_v44 = vpop.f32.mrb[14].mxu0 }
 0x705   :  { %v818_v45 = vadd.f32 %v814_v44, %v201_v43  ;;  %v1403_v46 = vpop.f32.mrb[15].mxu0 }
 0x707   :  { %v819_v47 = vmax.f32 %v818_v45, 0.0 }
 0x709   :  { %1437 = vmatmul.mubr.f32.vlgmr.msra.gmra.mrb[8].mxu1 %v819_v47 }
 0x7dc   :  { %v914_v48 = vpop.f32.mrb[8].mxu1 }
 0x7dd   :  { %v915_v50 = vadd.f32 %v944_v0, %v914_v48  ;;  %v1438_v51 = vpop.f32.mrb[9].mxu1 }
 0x7df   :  { %918 = vst [vmem:[#allocation9] sm:$0xff] %v915_v50 }
 0x7e0   :  { %1722 = shalt.err (!%p1719_p6)
}
 0x7e1   :  { %s1723_s4 = scalar_lea.hbm %s2064_s6, 128 }
 0x7e2   :  { %p1724_p7 = scmp.ne.s32.totalorder %s2064_s6, %s1723_s4  ;;  %p1727_p8 = scmp.lt.u32.totalorder %s1723_s4, %s2064_s6 }
 0x7e4   :  { %p1729_p9 = pnand %p1727_p8, %p1724_p7 }
 0x7e6   :  { %1732 = shalt.err (!%p1729_p9)
}
 0x7e7   :  { %928 = dma.vmem_to_hbm [thread:$0]  %s926_s19, 128, %s2064_s6, [#allocation6]  }
 0x7e8   :  { %1737 = dma.done.wait [#allocation6], 128  }
 0x7e9   :  { %1738 = vsyncadd [#allocation6], 4294967168 }
 0x7ea   :  { %932 = vsyncpa [#allocation5], 1 }
 0x7eb   :  { %933 = vsyncpa [#allocation8], 1 }
 0x7ec   :  { %934 = vsyncpa [#allocation6], 1 }

// kernel: tpu_custom_call.1
= control target key start
LH: loop header
LB: loop body
LE: loop exit
PB: predicated region body
PF: predicated region fallthrough
CT: control target
= control target key end

     0   :  { %11 = vsyncpa [#allocation5], 0  ;;  %s2058_s0 = inlined_call_operand.vmem [shape: f32[1,64,16], index: 0, kind: input, shape index: {}]   ;;  %s2059_s1 = inlined_call_operand.vmem [shape: f32[16,128], index: 1, kind: input, shape index: {}]   ;;  %s2060_s2 = inlined_call_operand.vmem [shape: f32[1,128], index: 2, kind: input, shape index: {}]   ;;  %s2061_s3 = inlined_call_operand.hbm [shape: f32[128,128], index: 3, kind: input, shape index: {}]   ;;  %s2062_s4 = inlined_call_operand.hbm [shape: f32[128,128], index: 4, kind: input, shape index: {}]   ;;  %s2063_s5 = inlined_call_operand.vmem [shape: f32[1,128], index: 5, kind: input, shape index: {}]   ;;  %s2064_s6 = inlined_call_operand.hbm [shape: f32[8,128], index: 6, kind: output, shape index: {}]  }
   0x1   :  { %12 = vsyncpa [#allocation8], 0 }
   0x2   :  { %13 = vsyncpa [#allocation6], 0  ;;  %s1739_s21 = smov [#allocation4]   ;;  %s1667_s25 = scalar_lea.hbm %s2061_s3, 2048 }
   0x3   :  { %s25_s22 = sshll.u32 %s1739_s21, 4  ;;  %p1668_p0 = scmp.ne.s32.totalorder %s2061_s3, %s1667_s25  ;;  %s26_s22 = int_to_ptr.vmem [resolvable:$true] %s25_s22 }
   0x4   :  { %p1671_p1 = scmp.lt.u32.totalorder %s1667_s25, %s2061_s3 }
   0x6   :  { %p1673_p2 = pnand %p1671_p1, %p1668_p0 }
   0x8   :  { %1676 = shalt.err (!%p1673_p2)
}
   0x9   :  { %s1677_s30 = scalar_lea.vmem %s26_s22, 2048  ;;  %p1682_p4 = scmp.lt.s32.totalorder %s26_s22, %s26_s22 }
   0xa   :  { %p1678_p3 = scmp.ne.s32.totalorder %s26_s22, %s1677_s30  ;;  %p1683_p5 = scmp.lt.s32.totalorder %s1677_s30, %s1677_s30 }
   0xc   :  { %p1684_p6 = por %p1683_p5, %p1682_p4 }
   0xe   :  { %p1685_p7 = pnand %p1684_p6, %p1678_p3 }
  0x10   :  { %1688 = shalt.err (!%p1685_p7)
}
  0x11   :  { %s1740_s7 = smov 128   ;;  %s1741_s8 = smov 8  }
  0x12   :  { %31 = dma.hbm_to_vmem [thread:$0]  %s2061_s3, 2048, %s26_s22, [#allocation5], %s1740_s7, %s1740_s7, %s1741_s8  }
  0x13   :  { %s1742_s11 = smov [#allocation7]   ;;  %s1689_s15 = scalar_lea.hbm %s2062_s4, 2048 }
  0x14   :  { %s37_s12 = sshll.u32 %s1742_s11, 4  ;;  %p1690_p8 = scmp.ne.s32.totalorder %s2062_s4, %s1689_s15  ;;  %s38_s12 = int_to_ptr.vmem [resolvable:$true] %s37_s12 }
  0x15   :  { %p1693_p9 = scmp.lt.u32.totalorder %s1689_s15, %s2062_s4 }
  0x17   :  { %p1695_p10 = pnand %p1693_p9, %p1690_p8 }
  0x19   :  { %1698 = shalt.err (!%p1695_p10)
}
  0x1a   :  { %s1699_s20 = scalar_lea.vmem %s38_s12, 2048  ;;  %p1704_p12 = scmp.lt.s32.totalorder %s38_s12, %s38_s12 }
  0x1b   :  { %p1700_p11 = scmp.ne.s32.totalorder %s38_s12, %s1699_s20  ;;  %p1705_p13 = scmp.lt.s32.totalorder %s1699_s20, %s1699_s20 }
  0x1d   :  { %p1706_p0 = por %p1705_p13, %p1704_p12 }
  0x1f   :  { %p1707_p1 = pnand %p1706_p0, %p1700_p11 }
  0x21   :  { %1710 = shalt.err (!%p1707_p1)
}
  0x22   :  { %43 = dma.hbm_to_vmem [thread:$0]  %s2062_s4, 2048, %s38_s12, [#allocation8], %s1740_s7, %s1740_s7, %s1741_s8  }
  0x23   :  { %1733 = dma.done.wait [#allocation5], 2048  }
  0x24   :  { %1734 = vsyncadd [#allocation5], 4294965248 }
  0x25   :  { %1735 = dma.done.wait [#allocation8], 2048  }
  0x26   :  { %1736 = vsyncadd [#allocation8], 4294965248  ;;  %v1743_v0 = vmov 0.0|0.0   ;;  %vm1744_vm0 = vmmov 0   ;;  %v1745_v1 = vmov 0.0   ;;  %v212_v2 = vld [vmem:[#allocation4] sm:$0xff] }
  0x27   :  { %1443 = vmatprep.subr.bf16.mxu1 %v1743_v0  ;;  %1156 = vmatprep.mubr.msk.f32.mxu1 %vm1744_vm0, %v1745_v1  ;;  %v213_v3 = vld [vmem:[#allocation4 + $0x8] sm:$0xff]  ;;  %v214_v4 = vld [vmem:[#allocation4 + $0x10] sm:$0xff]  ;;  %v215_v6 = vld [vmem:[#allocation4 + $0x18] sm:$0xff]  ;;  %vm74_vm1 = vcmask 130048   ;;  %s1746_s18 = smov [#allocation9]  }
  0x28   :  { %v1809_v5 = vpack.c.bf16 %v213_v3, %v212_v2  ;;  %v1812_v7 = vpack.c.bf16 %v215_v6, %v214_v4  ;;  %v216_v8 = vld [vmem:[#allocation4 + $0x20] sm:$0xff]  ;;  %v217_v9 = vld [vmem:[#allocation4 + $0x28] sm:$0xff]  ;;  %v218_v15 = vld [vmem:[#allocation4 + $0x30] sm:$0xff]  ;;  %s925_s19 = sshll.u32 %s1746_s18, 4  ;;  %s926_s19 = int_to_ptr.vmem [resolvable:$true] %s925_s19 }
  0x29   :  { %v65_v10 = vld [vmem:[%s2059_s1] sm:$0xff]  ;;  %v66_v11 = vld [vmem:[%s2059_s1 + $0x8] sm:$0xff]  ;;  %v1826_v14 = vpack.c.bf16 %v217_v9, %v216_v8  ;;  %v219_v16 = vld [vmem:[#allocation4 + $0x38] sm:$0xff]  ;;  %s1711_s20 = scalar_lea.vmem %s926_s19, 128  ;;  %p1716_p3 = scmp.lt.s32.totalorder %s926_s19, %s926_s19 }
  0x2a   :  { %1445 = vmatpush3.bf16.msra.mxu1 %v1809_v5  ;;  %v1439_v12 = vpack.c.bf16 %v66_v11, %v65_v10  ;;  %v57_v13 = vld [vmem:[%s2058_s0] sm:$0xff]  ;;  %v58_v17 = vld [vmem:[%s2058_s0 + $0x8] sm:$0xff]  ;;  %v59_v18 = vld [vmem:[%s2058_s0 + $0x10] sm:$0xff]  ;;  %v1837_v19 = vpack.c.bf16 %v219_v16, %v218_v15  ;;  %p1712_p2 = scmp.ne.s32.totalorder %s926_s19, %s1711_s20  ;;  %p1717_p4 = scmp.lt.s32.totalorder %s1711_s20, %s1711_s20 }
  0x2b   :  { %1446 = vmatprep.subr.bf16.mxu1 %v1743_v0  ;;  %1112 = vmatprep.mubr.msk.f32.mxu0 %vm74_vm1, %v57_v13  ;;  %v220_v20 = vld [vmem:[#allocation4 + $0x40] sm:$0xff]  ;;  %v221_v21 = vld [vmem:[#allocation4 + $0x48] sm:$0xff]  ;;  %v60_v22 = vld [vmem:[%s2058_s0 + $0x18] sm:$0xff] }
  0x2c   :  { %1440 = vmatprep.subr.bf16.mxu0 %v1439_v12  ;;  %v61_v23 = vld [vmem:[%s2058_s0 + $0x20] sm:$0xff]  ;;  %v1851_v24 = vpack.c.bf16 %v221_v21, %v220_v20  ;;  %v222_v25 = vld [vmem:[#allocation4 + $0x50] sm:$0xff]  ;;  %v223_v26 = vld [vmem:[#allocation4 + $0x58] sm:$0xff]  ;;  %p1718_p5 = por %p1717_p4, %p1716_p3 }
  0x2d   :  { %1442 = vmatpush3.bf16.msra.mxu0 %v1439_v12  ;;  %v1859_v27 = vpack.c.bf16 %v223_v26, %v222_v25  ;;  %v224_v28 = vld [vmem:[#allocation4 + $0x60] sm:$0xff]  ;;  %v225_v29 = vld [vmem:[#allocation4 + $0x68] sm:$0xff]  ;;  %v226_v31 = vld [vmem:[#allocation4 + $0x70] sm:$0xff] }
  0x2e   :  { %1448 = vmatpush3.bf16.msra.mxu1 %v1812_v7  ;;  %1467 = vmatprep.subr.bf16.mxu0 %v1743_v0  ;;  %v1865_v30 = vpack.c.bf16 %v225_v29, %v224_v28  ;;  %v227_v32 = vld [vmem:[#allocation4 + $0x78] sm:$0xff]  ;;  %v62_v34 = vld [vmem:[%s2058_s0 + $0x28] sm:$0xff]  ;;  %v63_v35 = vld [vmem:[%s2058_s0 + $0x30] sm:$0xff]  ;;  %p1719_p6 = pnand %p1718_p5, %p1712_p2 }
  0x2f   :  { %1449 = vmatprep.subr.bf16.mxu1 %v1743_v0  ;;  %v1871_v33 = vpack.c.bf16 %v227_v32, %v226_v31  ;;  %v64_v36 = vld [vmem:[%s2058_s0 + $0x38] sm:$0xff]  ;;  %v1922_v41 = vld [vmem:[%s2060_s2] ss:$0 sm:$0xff]  ;;  %v826_v15 = vld [vmem:[#allocation7 + $0x8] sm:$0xff] }
  0x30   :  { %1113 = vmatmul.mubr.msk.f32.vlgmr.msra.gmra.mrb[0].mxu0 %vm74_vm1, %v58_v17  ;;  %v827_v16 = vld [vmem:[#allocation7 + $0x10] sm:$0xff]  ;;  %v829_v20 = vld [vmem:[#allocation7 + $0x20] sm:$0xff]  ;;  %v830_v21 = vld [vmem:[#allocation7 + $0x28] sm:$0xff] }
  0x31   :  { %1469 = vmatpush3.bf16.msra.mxu0 %v1809_v5  ;;  %1115 = vmatprep.mubr.msk.f32.mxu0 %vm74_vm1, %v59_v18  ;;  %v828_v18 = vld [vmem:[#allocation7 + $0x18] sm:$0xff]  ;;  %v834_v26 = vld [vmem:[#allocation7 + $0x48] sm:$0xff]  ;;  %v835_v28 = vld [vmem:[#allocation7 + $0x50] sm:$0xff] }
  0x32   :  { %1451 = vmatpush3.bf16.msra.mxu1 %v1826_v14  ;;  %1470 = vmatprep.subr.bf16.mxu0 %v1743_v0  ;;  %v836_v29 = vld [vmem:[#allocation7 + $0x58] sm:$0xff]  ;;  %v837_v31 = vld [vmem:[#allocation7 + $0x60] sm:$0xff]  ;;  %v838_v32 = vld [vmem:[#allocation7 + $0x68] sm:$0xff] }
  0x33   :  { %1452 = vmatprep.subr.bf16.mxu1 %v1743_v0 }
  0x34   :  { %1116 = vmatmul.mubr.msk.f32.gmra.mrb[2].mxu0 %vm74_vm1, %v60_v22  ;;  %v1642_v22 = vpack.c.bf16 %v830_v21, %v829_v20 }
  0x35   :  { %1472 = vmatpush3.bf16.msra.mxu0 %v1812_v7  ;;  %1118 = vmatprep.mubr.msk.f32.mxu0 %vm74_vm1, %v61_v23  ;;  %v831_v23 = vld [vmem:[#allocation7 + $0x30] sm:$0xff] }
  0x36   :  { %1454 = vmatpush3.bf16.msra.mxu1 %v1837_v19  ;;  %1473 = vmatprep.subr.bf16.mxu0 %v1743_v0 }
  0x37   :  { %1455 = vmatprep.subr.bf16.mxu1 %v1743_v0 }
  0x38   :  { %1119 = vmatmul.mubr.msk.f32.gmra.mrb[4].mxu0 %vm74_vm1, %v62_v34 }
  0x39   :  { %1475 = vmatpush3.bf16.msra.mxu0 %v1826_v14  ;;  %1121 = vmatprep.mubr.msk.f32.mxu0 %vm74_vm1, %v63_v35 }
  0x3a   :  { %1457 = vmatpush3.bf16.msra.mxu1 %v1851_v24  ;;  %1476 = vmatprep.subr.bf16.mxu0 %v1743_v0 }
  0x3b   :  { %1458 = vmatprep.subr.bf16.mxu1 %v1743_v0 }
  0x3c   :  { %1122 = vmatmul.mubr.msk.f32.gmra.mrb[6].mxu0 %vm74_vm1, %v64_v36 }
  0x3d   :  { %1478 = vmatpush3.bf16.msra.mxu0 %v1837_v19  ;;  %1191 = vmatprep.mubr.msk.f32.mxu0 %vm1744_vm0, %v1745_v1 }
  0x3e   :  { %1460 = vmatpush3.bf16.msra.mxu1 %v1859_v27  ;;  %1479 = vmatprep.subr.bf16.mxu0 %v1743_v0 }
  0x3f   :  { %1461 = vmatprep.subr.bf16.mxu1 %v1743_v0 }
  0x41   :  { %1481 = vmatpush3.bf16.msra.mxu0 %v1851_v24 }
  0x42   :  { %1463 = vmatpush3.bf16.msra.mxu1 %v1865_v30  ;;  %1482 = vmatprep.subr.bf16.mxu0 %v1743_v0 }
  0x43   :  { %1464 = vmatprep.subr.bf16.mxu1 %v1743_v0 }
  0x45   :  { %1484 = vmatpush3.bf16.msra.mxu0 %v1859_v27 }
  0x46   :  { %1466 = vmatpush3.bf16.msra.mxu1 %v1871_v33  ;;  %1485 = vmatprep.subr.bf16.mxu0 %v1743_v0 }
  0x47   :  { %1491 = vmatprep.subr.bf16.mxu1 %v1743_v0 }
  0x49   :  { %1157 = vmatmul.mubr.f32.vlgmr.msra.gmra.mrb[0].mxu1 %v1745_v1  ;;  %1487 = vmatpush3.bf16.msra.mxu0 %v1865_v30 }
  0x4a   :  { %1493 = vmatpush3.bf16.msra.mxu1 %v1809_v5  ;;  %1226 = vmatprep.mubr.msk.f32.mxu1 %vm1744_vm0, %v1745_v1 }
  0x4b   :  { %1494 = vmatprep.subr.bf16.mxu1 %v1743_v0  ;;  %1488 = vmatprep.subr.bf16.mxu0 %v1743_v0 }
  0x4d   :  { %1490 = vmatpush3.bf16.msra.mxu0 %v1871_v33 }
  0x4e   :  { %1496 = vmatpush3.bf16.msra.mxu1 %v1812_v7  ;;  %1515 = vmatprep.subr.bf16.mxu0 %v1743_v0 }
  0x4f   :  { %1497 = vmatprep.subr.bf16.mxu1 %v1743_v0 }
  0x52   :  { %1499 = vmatpush3.bf16.msra.mxu1 %v1826_v14 }
  0x53   :  { %1500 = vmatprep.subr.bf16.mxu1 %v1743_v0 }
  0x56   :  { %1502 = vmatpush3.bf16.msra.mxu1 %v1837_v19 }
  0x57   :  { %1503 = vmatprep.subr.bf16.mxu1 %v1743_v0 }
  0x5a   :  { %1505 = vmatpush3.bf16.msra.mxu1 %v1851_v24 }
  0x5b   :  { %1506 = vmatprep.subr.bf16.mxu1 %v1743_v0 }
  0x5e   :  { %1508 = vmatpush3.bf16.msra.mxu1 %v1859_v27 }
  0x5f   :  { %1509 = vmatprep.subr.bf16.mxu1 %v1743_v0 }
  0x62   :  { %1511 = vmatpush3.bf16.msra.mxu1 %v1865_v30 }
  0x63   :  { %1512 = vmatprep.subr.bf16.mxu1 %v1743_v0 }
  0x66   :  { %1514 = vmatpush3.bf16.msra.mxu1 %v1871_v33 }
  0x67   :  { %1539 = vmatprep.subr.bf16.mxu1 %v1743_v0 }
 0x103   :  { %v1114_v37 = vpop.f32.mrb[0].mxu0 }
 0x104   :  { %v165_v38 = vpop.f32.mrb[1].mxu0  ;;  %v171_v51 = vadd.f32 %v1114_v37, %v1922_v41 }
 0x105   :  { %v166_v42 = vadd.f32 %v1922_v41, %v165_v38 }
 0x107   :  { %v1917_v39 = vpop.f32.mrb[2].mxu0 }
 0x108   :  { %v175_v40 = vpop.f32.mrb[3].mxu0  ;;  %v181_v61 = vadd.f32 %v1917_v39, %v1922_v41  ;;  %v839_v39 = vld [vmem:[#allocation7 + $0x70] sm:$0xff] }
 0x109   :  { %v176_v56 = vadd.f32 %v1922_v41, %v175_v40  ;;  %v840_v40 = vld [vmem:[#allocation7 + $0x78] sm:$0xff] }
 0x10b   :  { %v1943_v47 = vpop.f32.mrb[4].mxu0 }
 0x10c   :  { %v1945_v48 = vpop.f32.mrb[5].mxu0 }
 0x10d   :  { %v186_v4 = vadd.f32 %v1922_v41, %v1945_v48 }
 0x10f   :  { %v1947_v49 = vpop.f32.mrb[6].mxu0 }
 0x110   :  { %v1949_v50 = vpop.f32.mrb[7].mxu0 }
 0x111   :  { %v196_v34 = vadd.f32 %v1922_v41, %v1949_v50 }
 0x11c   :  { %v296_v43 = vpop.f32.mrb[0].mxu1 }
 0x11d   :  { %v300_v44 = vadd.f32 %v296_v43, %v166_v42  ;;  %v1158_v45 = vpop.f32.mrb[1].mxu1  ;;  %v1657_v42 = vpack.c.bf16 %v840_v40, %v839_v39  ;;  %v201_v43 = vadd.f32 %v1947_v49, %v1922_v41 }
 0x11f   :  { %v301_v46 = vmax.f32 %v300_v44, 0.0 }
 0x121   :  { %1192 = vmatmul.mubr.f32.vlgmr.msra.gmra.mrb[8].mxu0 %v301_v46 }
 0x122   :  { %1517 = vmatpush3.bf16.msra.mxu0 %v1809_v5  ;;  %1261 = vmatprep.mubr.msk.f32.mxu0 %vm1744_vm0, %v1745_v1 }
 0x123   :  { %1518 = vmatprep.subr.bf16.mxu0 %v1743_v0 }
 0x126   :  { %1520 = vmatpush3.bf16.msra.mxu0 %v1812_v7 }
 0x127   :  { %1521 = vmatprep.subr.bf16.mxu0 %v1743_v0 }
 0x12a   :  { %1523 = vmatpush3.bf16.msra.mxu0 %v1826_v14 }
 0x12b   :  { %1524 = vmatprep.subr.bf16.mxu0 %v1743_v0 }
 0x12e   :  { %1526 = vmatpush3.bf16.msra.mxu0 %v1837_v19 }
 0x12f   :  { %1527 = vmatprep.subr.bf16.mxu0 %v1743_v0 }
 0x132   :  { %1529 = vmatpush3.bf16.msra.mxu0 %v1851_v24 }
 0x133   :  { %1530 = vmatprep.subr.bf16.mxu0 %v1743_v0 }
 0x136   :  { %1532 = vmatpush3.bf16.msra.mxu0 %v1859_v27 }
 0x137   :  { %1533 = vmatprep.subr.bf16.mxu0 %v1743_v0 }
 0x13a   :  { %1535 = vmatpush3.bf16.msra.mxu0 %v1865_v30 }
 0x13b   :  { %1536 = vmatprep.subr.bf16.mxu0 %v1743_v0 }
 0x13e   :  { %1538 = vmatpush3.bf16.msra.mxu0 %v1871_v33 }
 0x13f   :  { %1563 = vmatprep.subr.bf16.mxu0 %v1743_v0 }
 0x1f4   :  { %v370_v52 = vpop.f32.mrb[8].mxu0 }
 0x1f5   :  { %v374_v53 = vadd.f32 %v370_v52, %v171_v51  ;;  %v1193_v54 = vpop.f32.mrb[9].mxu0 }
 0x1f7   :  { %v375_v55 = vmax.f32 %v374_v53, 0.0 }
 0x1f9   :  { %1227 = vmatmul.mubr.f32.vlgmr.msra.gmra.mrb[2].mxu1 %v375_v55 }
 0x1fa   :  { %1541 = vmatpush3.bf16.msra.mxu1 %v1809_v5  ;;  %1296 = vmatprep.mubr.msk.f32.mxu1 %vm1744_vm0, %v1745_v1 }
 0x1fb   :  { %1542 = vmatprep.subr.bf16.mxu1 %v1743_v0 }
 0x1fe   :  { %1544 = vmatpush3.bf16.msra.mxu1 %v1812_v7 }
 0x1ff   :  { %1545 = vmatprep.subr.bf16.mxu1 %v1743_v0 }
 0x202   :  { %1547 = vmatpush3.bf16.msra.mxu1 %v1826_v14 }
 0x203   :  { %1548 = vmatprep.subr.bf16.mxu1 %v1743_v0 }
 0x206   :  { %1550 = vmatpush3.bf16.msra.mxu1 %v1837_v19 }
 0x207   :  { %1551 = vmatprep.subr.bf16.mxu1 %v1743_v0 }
 0x20a   :  { %1553 = vmatpush3.bf16.msra.mxu1 %v1851_v24 }
 0x20b   :  { %1554 = vmatprep.subr.bf16.mxu1 %v1743_v0 }
 0x20e   :  { %1556 = vmatpush3.bf16.msra.mxu1 %v1859_v27 }
 0x20f   :  { %1557 = vmatprep.subr.bf16.mxu1 %v1743_v0 }
 0x212   :  { %1559 = vmatpush3.bf16.msra.mxu1 %v1865_v30 }
 0x213   :  { %1560 = vmatprep.subr.bf16.mxu1 %v1743_v0 }
 0x216   :  { %1562 = vmatpush3.bf16.msra.mxu1 %v1871_v33 }
 0x217   :  { %1587 = vmatprep.subr.bf16.mxu1 %v1743_v0 }
 0x2cc   :  { %v444_v57 = vpop.f32.mrb[2].mxu1 }
 0x2cd   :  { %v448_v58 = vadd.f32 %v444_v57, %v176_v56  ;;  %v1228_v59 = vpop.f32.mrb[3].mxu1 }
 0x2cf   :  { %v449_v60 = vmax.f32 %v448_v58, 0.0 }
 0x2d1   :  { %1262 = vmatmul.mubr.f32.vlgmr.msra.gmra.mrb[10].mxu0 %v449_v60 }
 0x2d2   :  { %1565 = vmatpush3.bf16.msra.mxu0 %v1809_v5  ;;  %1331 = vmatprep.mubr.msk.f32.mxu0 %vm1744_vm0, %v1745_v1 }
 0x2d3   :  { %1566 = vmatprep.subr.bf16.mxu0 %v1743_v0 }
 0x2d6   :  { %1568 = vmatpush3.bf16.msra.mxu0 %v1812_v7 }
 0x2d7   :  { %1569 = vmatprep.subr.bf16.mxu0 %v1743_v0 }
 0x2da   :  { %1571 = vmatpush3.bf16.msra.mxu0 %v1826_v14 }
 0x2db   :  { %1572 = vmatprep.subr.bf16.mxu0 %v1743_v0 }
 0x2de   :  { %1574 = vmatpush3.bf16.msra.mxu0 %v1837_v19 }
 0x2df   :  { %1575 = vmatprep.subr.bf16.mxu0 %v1743_v0 }
 0x2e2   :  { %1577 = vmatpush3.bf16.msra.mxu0 %v1851_v24 }
 0x2e3   :  { %1578 = vmatprep.subr.bf16.mxu0 %v1743_v0 }
 0x2e6   :  { %1580 = vmatpush3.bf16.msra.mxu0 %v1859_v27 }
 0x2e7   :  { %1581 = vmatprep.subr.bf16.mxu0 %v1743_v0 }
 0x2ea   :  { %1583 = vmatpush3.bf16.msra.mxu0 %v1865_v30 }
 0x2eb   :  { %1584 = vmatprep.subr.bf16.mxu0 %v1743_v0 }
 0x2ee   :  { %1586 = vmatpush3.bf16.msra.mxu0 %v1871_v33 }
 0x2ef   :  { %1611 = vmatprep.subr.bf16.mxu0 %v1743_v0 }
 0x3a4   :  { %v518_v62 = vpop.f32.mrb[10].mxu0 }
 0x3a5   :  { %v522_v63 = vadd.f32 %v518_v62, %v181_v61  ;;  %v1263_v2 = vpop.f32.mrb[11].mxu0 }
 0x3a7   :  { %v523_v3 = vmax.f32 %v522_v63, 0.0 }
 0x3a9   :  { %1297 = vmatmul.mubr.f32.vlgmr.msra.gmra.mrb[4].mxu1 %v523_v3 }
 0x3aa   :  { %1589 = vmatpush3.bf16.msra.mxu1 %v1809_v5  ;;  %1366 = vmatprep.mubr.msk.f32.mxu1 %vm1744_vm0, %v1745_v1 }
 0x3ab   :  { %1590 = vmatprep.subr.bf16.mxu1 %v1743_v0 }
 0x3ae   :  { %1592 = vmatpush3.bf16.msra.mxu1 %v1812_v7 }
 0x3af   :  { %1593 = vmatprep.subr.bf16.mxu1 %v1743_v0 }
 0x3b2   :  { %1595 = vmatpush3.bf16.msra.mxu1 %v1826_v14 }
 0x3b3   :  { %1596 = vmatprep.subr.bf16.mxu1 %v1743_v0 }
 0x3b6   :  { %1598 = vmatpush3.bf16.msra.mxu1 %v1837_v19 }
 0x3b7   :  { %1599 = vmatprep.subr.bf16.mxu1 %v1743_v0 }
 0x3ba   :  { %1601 = vmatpush3.bf16.msra.mxu1 %v1851_v24 }
 0x3bb   :  { %1602 = vmatprep.subr.bf16.mxu1 %v1743_v0 }
 0x3be   :  { %1604 = vmatpush3.bf16.msra.mxu1 %v1859_v27 }
 0x3bf   :  { %1605 = vmatprep.subr.bf16.mxu1 %v1743_v0 }
 0x3c2   :  { %1607 = vmatpush3.bf16.msra.mxu1 %v1865_v30 }
 0x3c3   :  { %1608 = vmatprep.subr.bf16.mxu1 %v1743_v0 }
 0x3c6   :  { %1610 = vmatpush3.bf16.msra.mxu1 %v1871_v33 }
 0x3c7   :  { %1635 = vmatprep.subr.bf16.mxu1 %v1743_v0 }
 0x47c   :  { %v592_v6 = vpop.f32.mrb[4].mxu1 }
 0x47d   :  { %v596_v8 = vadd.f32 %v592_v6, %v186_v4  ;;  %v1298_v9 = vpop.f32.mrb[5].mxu1 }
 0x47f   :  { %v597_v10 = vmax.f32 %v596_v8, 0.0 }
 0x481   :  { %1332 = vmatmul.mubr.f32.vlgmr.msra.gmra.mrb[12].mxu0 %v597_v10 }
 0x482   :  { %1613 = vmatpush3.bf16.msra.mxu0 %v1809_v5  ;;  %1401 = vmatprep.mubr.msk.f32.mxu0 %vm1744_vm0, %v1745_v1  ;;  %v191_v5 = vadd.f32 %v1943_v47, %v1922_v41 }
 0x483   :  { %1614 = vmatprep.subr.bf16.mxu0 %v1743_v0 }
 0x486   :  { %1616 = vmatpush3.bf16.msra.mxu0 %v1812_v7 }
 0x487   :  { %1617 = vmatprep.subr.bf16.mxu0 %v1743_v0 }
 0x48a   :  { %1619 = vmatpush3.bf16.msra.mxu0 %v1826_v14  ;;  %v825_v14 = vld [vmem:[#allocation7] sm:$0xff] }
 0x48b   :  { %1620 = vmatprep.subr.bf16.mxu0 %v1743_v0  ;;  %v1636_v17 = vpack.c.bf16 %v826_v15, %v825_v14 }
 0x48e   :  { %1622 = vmatpush3.bf16.msra.mxu0 %v1837_v19  ;;  %v1639_v19 = vpack.c.bf16 %v828_v18, %v827_v16 }
 0x48f   :  { %1623 = vmatprep.subr.bf16.mxu0 %v1743_v0 }
 0x492   :  { %1625 = vmatpush3.bf16.msra.mxu0 %v1851_v24  ;;  %v832_v24 = vld [vmem:[#allocation7 + $0x38] sm:$0xff] }
 0x493   :  { %1626 = vmatprep.subr.bf16.mxu0 %v1743_v0  ;;  %v1645_v25 = vpack.c.bf16 %v832_v24, %v831_v23 }
 0x496   :  { %1628 = vmatpush3.bf16.msra.mxu0 %v1859_v27 }
 0x497   :  { %1629 = vmatprep.subr.bf16.mxu0 %v1743_v0 }
 0x49a   :  { %1631 = vmatpush3.bf16.msra.mxu0 %v1865_v30  ;;  %v1651_v30 = vpack.c.bf16 %v836_v29, %v835_v28 }
 0x49b   :  { %1632 = vmatprep.subr.bf16.mxu0 %v1743_v0 }
 0x49e   :  { %1634 = vmatpush3.bf16.msra.mxu0 %v1871_v33  ;;  %v1654_v33 = vpack.c.bf16 %v838_v32, %v837_v31 }
 0x554   :  { %v666_v7 = vpop.f32.mrb[12].mxu0 }
 0x555   :  { %v670_v11 = vadd.f32 %v666_v7, %v191_v5  ;;  %v1333_v12 = vpop.f32.mrb[13].mxu0 }
 0x557   :  { %v671_v13 = vmax.f32 %v670_v11, 0.0 }
 0x559   :  { %1367 = vmatmul.mubr.f32.vlgmr.msra.gmra.mrb[6].mxu1 %v671_v13 }
 0x55a   :  { %1436 = vmatprep.mubr.msk.f32.mxu1 %vm1744_vm0, %v1745_v1  ;;  %1637 = vmatpush3.bf16.msra.mxu1 %v1636_v17  ;;  %v833_v1 = vld [vmem:[#allocation7 + $0x40] sm:$0xff] }
 0x55b   :  { %1638 = vmatprep.subr.bf16.mxu1 %v1743_v0  ;;  %v1648_v27 = vpack.c.bf16 %v834_v26, %v833_v1 }
 0x55e   :  { %1640 = vmatpush3.bf16.msra.mxu1 %v1639_v19 }
 0x55f   :  { %1641 = vmatprep.subr.bf16.mxu1 %v1743_v0 }
 0x562   :  { %1643 = vmatpush3.bf16.msra.mxu1 %v1642_v22 }
 0x563   :  { %1644 = vmatprep.subr.bf16.mxu1 %v1743_v0 }
 0x566   :  { %1646 = vmatpush3.bf16.msra.mxu1 %v1645_v25 }
 0x567   :  { %1647 = vmatprep.subr.bf16.mxu1 %v1743_v0 }
 0x56a   :  { %1649 = vmatpush3.bf16.msra.mxu1 %v1648_v27 }
 0x56b   :  { %1650 = vmatprep.subr.bf16.mxu1 %v1743_v0 }
 0x56e   :  { %1652 = vmatpush3.bf16.msra.mxu1 %v1651_v30 }
 0x56f   :  { %1653 = vmatprep.subr.bf16.mxu1 %v1743_v0 }
 0x572   :  { %1655 = vmatpush3.bf16.msra.mxu1 %v1654_v33 }
 0x573   :  { %1656 = vmatprep.subr.bf16.mxu1 %v1743_v0  ;;  %v944_v0 = vld [vmem:[%s2063_s5] ss:$0 sm:$0xff] }
 0x576   :  { %1658 = vmatpush3.bf16.msra.mxu1 %v1657_v42 }
 0x62c   :  { %v740_v35 = vpop.f32.mrb[6].mxu1 }
 0x62d   :  { %v744_v36 = vadd.f32 %v740_v35, %v196_v34  ;;  %v1368_v37 = vpop.f32.mrb[7].mxu1 }
 0x62f   :  { %v745_v38 = vmax.f32 %v744_v36, 0.0 }
 0x631   :  { %1402 = vmatmul.mubr.f32.vlgmr.msra.gmra.mrb[14].mxu0 %v745_v38 }
 0x704   :  { %v814_v44 = vpop.f32.mrb[14].mxu0 }
 0x705   :  { %v818_v45 = vadd.f32 %v814_v44, %v201_v43  ;;  %v1403_v46 = vpop.f32.mrb[15].mxu0 }
 0x707   :  { %v819_v47 = vmax.f32 %v818_v45, 0.0 }
 0x709   :  { %1437 = vmatmul.mubr.f32.vlgmr.msra.gmra.mrb[8].mxu1 %v819_v47 }
 0x7dc   :  { %v914_v48 = vpop.f32.mrb[8].mxu1 }
 0x7dd   :  { %v915_v50 = vadd.f32 %v944_v0, %v914_v48  ;;  %v1438_v51 = vpop.f32.mrb[9].mxu1 }
 0x7df   :  { %918 = vst [vmem:[#allocation9] sm:$0xff] %v915_v50 }
 0x7e0   :  { %1722 = shalt.err (!%p1719_p6)
}
 0x7e1   :  { %s1723_s4 = scalar_lea.hbm %s2064_s6, 128 }
 0x7e2   :  { %p1724_p7 = scmp.ne.s32.totalorder %s2064_s6, %s1723_s4  ;;  %p1727_p8 = scmp.lt.u32.totalorder %s1723_s4, %s2064_s6 }
 0x7e4   :  { %p1729_p9 = pnand %p1727_p8, %p1724_p7 }
 0x7e6   :  { %1732 = shalt.err (!%p1729_p9)
}
 0x7e7   :  { %928 = dma.vmem_to_hbm [thread:$0]  %s926_s19, 128, %s2064_s6, [#allocation6]  }
 0x7e8   :  { %1737 = dma.done.wait [#allocation6], 128  }
 0x7e9   :  { %1738 = vsyncadd [#allocation6], 4294967168 }
 0x7ea   :  { %932 = vsyncpa [#allocation5], 1 }
 0x7eb   :  { %933 = vsyncpa [#allocation8], 1 }
 0x7ec   :  { %934 = vsyncpa [#allocation6], 1 }

</bundles_post_ra>
